<compile_context>
chip_gen: v7x
topology: tpu7x:2x2x1
jax: 0.10.0
libtpu: 0.0.40
codegen_flags: <defaults>
</compile_context>

<pallas_src>
import functools

import jax
import jax.numpy as jnp
from jax.experimental import pallas as pl
from jax.experimental.pallas import tpu as pltpu


def _round_up(x, m):
    return ((x + m - 1) // m) * m


def _pad2d(x, rows, cols):
    r, c = x.shape
    if r == rows and c == cols:
        return x
    return jnp.pad(x, ((0, rows - r), (0, cols - c)))


def bcfm_kernel(
    fr_ref, fh_ref,
    w_ph, b_ph,          # proj_h:    (Hp, Dp), (1, Dp)
    w_ar, b_ar,          # alpha_r:   (Dp, Dp), (1, Dp)
    w_br, b_br,          # beta_r:    (Dp, Dp), (1, Dp)
    w_pr, b_pr,          # proj_r:    (Dp, Hp), (1, Hp)
    w_ah, b_ah,          # alpha_h:   (Hp, Hp), (1, Hp)
    w_bh, b_bh,          # beta_h:    (Hp, Hp), (1, Hp)
    w_fu, b_fu,          # fuse_proj: (Hp, Dp), (1, Dp)
    w_g_r, w_g_h, b_g,   # gate split: (Dp, Dp), (Dp, Dp), (1, Dp)
    out_ref,
    *, mxu_dtype,
):
    f32 = jnp.float32

    # MXU operands stay in their storage dtype (bf16 by default); f32 accumulate.
    fr_m = fr_ref[...]                       # (TM, Dp)
    fh_m = fh_ref[...]                       # (TM, Hp)
    # f32 copies for the VPU modulation epilogue.
    fr = fr_m.astype(f32)
    fh = fh_m.astype(f32)

    # F_h_proj = proj_h(F_h)
    fh_proj = jnp.dot(fh_m, w_ph[...], preferred_element_type=f32) + b_ph[...]
    fh_proj_m = fh_proj.astype(mxu_dtype)

    # alpha_r / beta_r from F_h_proj, modulate F_r
    alpha_r = jax.nn.sigmoid(
        jnp.dot(fh_proj_m, w_ar[...], preferred_element_type=f32) + b_ar[...])
    beta_r = jnp.dot(fh_proj_m, w_br[...], preferred_element_type=f32) + b_br[...]
    fr_mod = alpha_r * fr + beta_r

    # F_r_proj = proj_r(F_r)
    fr_proj = jnp.dot(fr_m, w_pr[...], preferred_element_type=f32) + b_pr[...]
    fr_proj_m = fr_proj.astype(mxu_dtype)

    # alpha_h / beta_h from F_r_proj, modulate F_h
    alpha_h = jax.nn.sigmoid(
        jnp.dot(fr_proj_m, w_ah[...], preferred_element_type=f32) + b_ah[...])
    beta_h = jnp.dot(fr_proj_m, w_bh[...], preferred_element_type=f32) + b_bh[...]
    fh_mod = alpha_h * fh + beta_h

    # F_h_mod_proj = fuse_proj(F_h_mod)
    fh_mod_proj = (
        jnp.dot(fh_mod.astype(mxu_dtype), w_fu[...], preferred_element_type=f32)
        + b_fu[...])

    # gate(concat([F_r_mod, F_h_mod_proj])) with the concat fused into two matmuls
    gate = jax.nn.sigmoid(
        jnp.dot(fr_mod.astype(mxu_dtype), w_g_r[...], preferred_element_type=f32)
        + jnp.dot(fh_mod_proj.astype(mxu_dtype), w_g_h[...], preferred_element_type=f32)
        + b_g[...])

    out_ref[...] = (gate * fr_mod + (1.0 - gate) * fh_mod_proj).astype(out_ref.dtype)


def bcfm_forward(F_r, F_h, params, *, tm=256, mxu_dtype=jnp.bfloat16):
    """F_r: (B, S, d_model), F_h: (B, S, hidden_size) -> (B, S, d_model)."""
    B, S, D = F_r.shape
    H = F_h.shape[-1]
    M = B * S
    out_dtype = F_r.dtype

    # Lane-dense feature dims (multiples of 128); sublane-aligned row tile.
    itemsize = jnp.dtype(mxu_dtype).itemsize
    sub = 8 if itemsize >= 4 else 16
    Dp = _round_up(D, 128)
    Hp = _round_up(H, 128)
    tm_eff = _round_up(min(tm, _round_up(M, sub)), sub)
    Mp = _round_up(M, tm_eff)
    grid = Mp // tm_eff

    fr2 = _pad2d(F_r.reshape(M, D), Mp, Dp).astype(mxu_dtype)
    fh2 = _pad2d(F_h.reshape(M, H), Mp, Hp).astype(mxu_dtype)

    def wmat(name, rows, cols):
        return _pad2d(params[name], rows, cols).astype(mxu_dtype)

    def bias(name, cols):
        return _pad2d(params[name], 1, cols).astype(jnp.float32)

    weight_args = (
        wmat("w_ph", Hp, Dp), bias("b_ph", Dp),
        wmat("w_ar", Dp, Dp), bias("b_ar", Dp),
        wmat("w_br", Dp, Dp), bias("b_br", Dp),
        wmat("w_pr", Dp, Hp), bias("b_pr", Hp),
        wmat("w_ah", Hp, Hp), bias("b_ah", Hp),
        wmat("w_bh", Hp, Hp), bias("b_bh", Hp),
        wmat("w_fu", Hp, Dp), bias("b_fu", Dp),
        wmat("w_g_r", Dp, Dp), wmat("w_g_h", Dp, Dp), bias("b_g", Dp),
    )

    # Row-tiled inputs/outputs; weights are resident (constant index_map).
    row_spec_d = pl.BlockSpec((tm_eff, Dp), lambda i: (i, 0))
    row_spec_h = pl.BlockSpec((tm_eff, Hp), lambda i: (i, 0))
    weight_specs = [pl.BlockSpec(w.shape, lambda i: (0, 0)) for w in weight_args]

    # VMEM budget: resident weights + double-buffered row tiles + live f32
    # intermediates.  Raise the scoped limit, clamped under v7x's 64 MiB VMEM.
    weight_bytes = sum(int(w.size) * w.dtype.itemsize for w in weight_args)
    io_tile_bytes = (tm_eff * (Dp + Hp) * itemsize
                     + tm_eff * Dp * jnp.dtype(out_dtype).itemsize)
    interm_bytes = 12 * tm_eff * max(Dp, Hp) * 4
    needed = 2 * weight_bytes + 2 * io_tile_bytes + interm_bytes
    vmem_limit = int(min(max(needed, 32 * 1024 * 1024), 64 * 1024 * 1024))

    flops = 2 * Mp * (3 * Hp * Dp + 4 * Dp * Dp + 2 * Hp * Hp)
    transcendentals = Mp * (2 * Dp + Hp)  # sigmoids
    bytes_accessed = (Mp * (Dp + Hp) * itemsize
                      + Mp * Dp * jnp.dtype(out_dtype).itemsize
                      + weight_bytes)

    out2 = pl.pallas_call(
        functools.partial(bcfm_kernel, mxu_dtype=mxu_dtype),
        out_shape=jax.ShapeDtypeStruct((Mp, Dp), out_dtype),
        grid_spec=pltpu.PrefetchScalarGridSpec(
            num_scalar_prefetch=0,
            grid=(grid,),
            in_specs=[row_spec_d, row_spec_h] + weight_specs,
            out_specs=row_spec_d,
        ),
        compiler_params=pltpu.CompilerParams(
            dimension_semantics=("parallel",),
            vmem_limit_bytes=vmem_limit),
        cost_estimate=pl.CostEstimate(
            flops=flops,
            transcendentals=transcendentals,
            bytes_accessed=bytes_accessed),
    )(fr2, fh2, *weight_args)

    return out2[:M, :D].reshape(B, S, D)


def init_params(key, d_model, hidden_size):
    """Deterministic Linear params; weights stored as (in_features, out_features)."""
    def linear(k, fan_in, fan_out):
        kw, kb = jax.random.split(k)
        bound = 1.0 / jnp.sqrt(fan_in)
        w = jax.random.uniform(kw, (fan_in, fan_out), jnp.float32, -bound, bound)
        b = jax.random.uniform(kb, (1, fan_out), jnp.float32, -bound, bound)
        return w, b

    keys = jax.random.split(key, 8)
    D, H = d_model, hidden_size
    p = {}
    p["w_ph"], p["b_ph"] = linear(keys[0], H, D)      # proj_h
    p["w_ar"], p["b_ar"] = linear(keys[1], D, D)      # alpha_r linear
    p["w_br"], p["b_br"] = linear(keys[2], D, D)      # beta_r
    p["w_pr"], p["b_pr"] = linear(keys[3], D, H)      # proj_r
    p["w_ah"], p["b_ah"] = linear(keys[4], H, H)      # alpha_h linear
    p["w_bh"], p["b_bh"] = linear(keys[5], H, H)      # beta_h
    p["w_fu"], p["b_fu"] = linear(keys[6], H, D)      # fuse_proj
    w_g, p["b_g"] = linear(keys[7], 2 * D, D)         # gate linear on concat
    p["w_g_r"] = w_g[:D, :]                           # acts on F_r_mod
    p["w_g_h"] = w_g[D:, :]                           # acts on F_h_mod_proj
    return p


def bcfm_reference(F_r, F_h, p):
    """Pure-JAX f32 reference mirroring the PyTorch forward."""
    fh_proj = F_h @ p["w_ph"] + p["b_ph"]
    alpha_r = jax.nn.sigmoid(fh_proj @ p["w_ar"] + p["b_ar"])
    beta_r = fh_proj @ p["w_br"] + p["b_br"]
    fr_mod = alpha_r * F_r + beta_r
    fr_proj = F_r @ p["w_pr"] + p["b_pr"]
    alpha_h = jax.nn.sigmoid(fr_proj @ p["w_ah"] + p["b_ah"])
    beta_h = fr_proj @ p["w_bh"] + p["b_bh"]
    fh_mod = alpha_h * F_h + beta_h
    fh_mod_proj = fh_mod @ p["w_fu"] + p["b_fu"]
    gate = jax.nn.sigmoid(fr_mod @ p["w_g_r"] + fh_mod_proj @ p["w_g_h"] + p["b_g"])
    return gate * fr_mod + (1.0 - gate) * fh_mod_proj


if __name__ == "__main__":
    B, S = 2, 8
    d_model, hidden_size = 32, 64

    key = jax.random.PRNGKey(0)
    k_fr, k_fh, k_p = jax.random.split(key, 3)
    F_r = jax.random.normal(k_fr, (B, S, d_model), jnp.float32)
    F_h = jax.random.normal(k_fh, (B, S, hidden_size), jnp.float32)
    params = init_params(k_p, d_model, hidden_size)

    ref = bcfm_reference(F_r, F_h, params)

    # f32 MXU path: bit-close to the reference.
    out_f32 = jax.block_until_ready(
        bcfm_forward(F_r, F_h, params, mxu_dtype=jnp.float32))
    assert out_f32.shape == (B, S, d_model)
    assert jnp.allclose(out_f32, ref, atol=1e-5, rtol=1e-5), "f32 mismatch vs reference"

    # Default bf16-operand MXU path (f32 accumulation): looser tolerance.
    out_bf16 = jax.block_until_ready(
        bcfm_forward(F_r, F_h, params, mxu_dtype=jnp.bfloat16))
    assert out_bf16.shape == (B, S, d_model)
    assert jnp.allclose(out_bf16, ref, atol=5e-2, rtol=5e-2), "bf16 mismatch vs reference"

    print("KERNEL_OK")
</pallas_src>

<mosaic_0001>
module attributes {stable_mosaic.version = 11 : i64} {
  func.func @bcfm_kernel(%arg0: i32, %arg1: memref<16x128xf32, #tpu.memory_space<vmem>>, %arg2: memref<16x128xf32, #tpu.memory_space<vmem>>, %arg3: memref<128x128xf32, #tpu.memory_space<vmem>>, %arg4: memref<1x128xf32, #tpu.memory_space<vmem>>, %arg5: memref<128x128xf32, #tpu.memory_space<vmem>>, %arg6: memref<1x128xf32, #tpu.memory_space<vmem>>, %arg7: memref<128x128xf32, #tpu.memory_space<vmem>>, %arg8: memref<1x128xf32, #tpu.memory_space<vmem>>, %arg9: memref<128x128xf32, #tpu.memory_space<vmem>>, %arg10: memref<1x128xf32, #tpu.memory_space<vmem>>, %arg11: memref<128x128xf32, #tpu.memory_space<vmem>>, %arg12: memref<1x128xf32, #tpu.memory_space<vmem>>, %arg13: memref<128x128xf32, #tpu.memory_space<vmem>>, %arg14: memref<1x128xf32, #tpu.memory_space<vmem>>, %arg15: memref<128x128xf32, #tpu.memory_space<vmem>>, %arg16: memref<1x128xf32, #tpu.memory_space<vmem>>, %arg17: memref<128x128xf32, #tpu.memory_space<vmem>>, %arg18: memref<128x128xf32, #tpu.memory_space<vmem>>, %arg19: memref<1x128xf32, #tpu.memory_space<vmem>>, %arg20: memref<16x128xf32, #tpu.memory_space<vmem>>) attributes {dimension_semantics = [#tpu.dimension_semantics<parallel>], iteration_bounds = array<i64: 1>, scalar_prefetch = 0 : i64, scratch_operands = 0 : i64, tpu.core_type = #tpu.core_type<tc>, window_params = [{transform_indices = @transform_0, window_bounds = array<i64: 16, 128>}, {transform_indices = @transform_1, window_bounds = array<i64: 16, 128>}, {pipeline_mode = #tpu.pipeline_mode<synchronous>, transform_indices = @transform_2, window_bounds = array<i64: 128, 128>}, {pipeline_mode = #tpu.pipeline_mode<synchronous>, transform_indices = @transform_3, window_bounds = array<i64: 1, 128>}, {pipeline_mode = #tpu.pipeline_mode<synchronous>, transform_indices = @transform_4, window_bounds = array<i64: 128, 128>}, {pipeline_mode = #tpu.pipeline_mode<synchronous>, transform_indices = @transform_5, window_bounds = array<i64: 1, 128>}, {pipeline_mode = #tpu.pipeline_mode<synchronous>, transform_indices = @transform_6, window_bounds = array<i64: 128, 128>}, {pipeline_mode = #tpu.pipeline_mode<synchronous>, transform_indices = @transform_7, window_bounds = array<i64: 1, 128>}, {pipeline_mode = #tpu.pipeline_mode<synchronous>, transform_indices = @transform_8, window_bounds = array<i64: 128, 128>}, {pipeline_mode = #tpu.pipeline_mode<synchronous>, transform_indices = @transform_9, window_bounds = array<i64: 1, 128>}, {pipeline_mode = #tpu.pipeline_mode<synchronous>, transform_indices = @transform_10, window_bounds = array<i64: 128, 128>}, {pipeline_mode = #tpu.pipeline_mode<synchronous>, transform_indices = @transform_11, window_bounds = array<i64: 1, 128>}, {pipeline_mode = #tpu.pipeline_mode<synchronous>, transform_indices = @transform_12, window_bounds = array<i64: 128, 128>}, {pipeline_mode = #tpu.pipeline_mode<synchronous>, transform_indices = @transform_13, window_bounds = array<i64: 1, 128>}, {pipeline_mode = #tpu.pipeline_mode<synchronous>, transform_indices = @transform_14, window_bounds = array<i64: 128, 128>}, {pipeline_mode = #tpu.pipeline_mode<synchronous>, transform_indices = @transform_15, window_bounds = array<i64: 1, 128>}, {pipeline_mode = #tpu.pipeline_mode<synchronous>, transform_indices = @transform_16, window_bounds = array<i64: 128, 128>}, {pipeline_mode = #tpu.pipeline_mode<synchronous>, transform_indices = @transform_17, window_bounds = array<i64: 128, 128>}, {pipeline_mode = #tpu.pipeline_mode<synchronous>, transform_indices = @transform_18, window_bounds = array<i64: 1, 128>}, {transform_indices = @transform_19, window_bounds = array<i64: 16, 128>}]} {
    %c0 = arith.constant 0 : index
    %c0_0 = arith.constant 0 : index
    %0 = vector.load %arg1[%c0, %c0_0] : memref<16x128xf32, #tpu.memory_space<vmem>>, vector<16x128xf32>
    %c0_1 = arith.constant 0 : index
    %c0_2 = arith.constant 0 : index
    %1 = vector.load %arg2[%c0_1, %c0_2] : memref<16x128xf32, #tpu.memory_space<vmem>>, vector<16x128xf32>
    %c0_3 = arith.constant 0 : index
    %c0_4 = arith.constant 0 : index
    %2 = vector.load %arg3[%c0_3, %c0_4] : memref<128x128xf32, #tpu.memory_space<vmem>>, vector<128x128xf32>
    %cst = arith.constant dense<0.000000e+00> : vector<16x128xf32>
    %3 = tpu.matmul %1, %2, %cst {dimension_numbers = #tpu.dot_dimension_numbers<[1], [0], [0], [1], [0, 0, 1, 1], [], []>} : vector<16x128xf32>, vector<128x128xf32>, vector<16x128xf32> -> vector<16x128xf32>
    %c0_5 = arith.constant 0 : index
    %c0_6 = arith.constant 0 : index
    %4 = vector.load %arg4[%c0_5, %c0_6] : memref<1x128xf32, #tpu.memory_space<vmem>>, vector<1x128xf32>
    %5 = vector.broadcast %4 : vector<1x128xf32> to vector<16x128xf32>
    %6 = arith.addf %3, %5 : vector<16x128xf32>
    %c0_7 = arith.constant 0 : index
    %c0_8 = arith.constant 0 : index
    %7 = vector.load %arg5[%c0_7, %c0_8] : memref<128x128xf32, #tpu.memory_space<vmem>>, vector<128x128xf32>
    %cst_9 = arith.constant dense<0.000000e+00> : vector<16x128xf32>
    %8 = tpu.matmul %6, %7, %cst_9 {dimension_numbers = #tpu.dot_dimension_numbers<[1], [0], [0], [1], [0, 0, 1, 1], [], []>} : vector<16x128xf32>, vector<128x128xf32>, vector<16x128xf32> -> vector<16x128xf32>
    %c0_10 = arith.constant 0 : index
    %c0_11 = arith.constant 0 : index
    %9 = vector.load %arg6[%c0_10, %c0_11] : memref<1x128xf32, #tpu.memory_space<vmem>>, vector<1x128xf32>
    %10 = vector.broadcast %9 : vector<1x128xf32> to vector<16x128xf32>
    %11 = arith.addf %8, %10 : vector<16x128xf32>
    %12 = arith.negf %11 : vector<16x128xf32>
    %13 = math.exp %12 : vector<16x128xf32>
    %cst_12 = arith.constant 1.000000e+00 : f32
    %14 = vector.broadcast %cst_12 : f32 to vector<16x128xf32>
    %15 = arith.addf %14, %13 : vector<16x128xf32>
    %16 = arith.divf %14, %15 : vector<16x128xf32>
    %c0_13 = arith.constant 0 : index
    %c0_14 = arith.constant 0 : index
    %17 = vector.load %arg7[%c0_13, %c0_14] : memref<128x128xf32, #tpu.memory_space<vmem>>, vector<128x128xf32>
    %cst_15 = arith.constant dense<0.000000e+00> : vector<16x128xf32>
    %18 = tpu.matmul %6, %17, %cst_15 {dimension_numbers = #tpu.dot_dimension_numbers<[1], [0], [0], [1], [0, 0, 1, 1], [], []>} : vector<16x128xf32>, vector<128x128xf32>, vector<16x128xf32> -> vector<16x128xf32>
    %c0_16 = arith.constant 0 : index
    %c0_17 = arith.constant 0 : index
    %19 = vector.load %arg8[%c0_16, %c0_17] : memref<1x128xf32, #tpu.memory_space<vmem>>, vector<1x128xf32>
    %20 = vector.broadcast %19 : vector<1x128xf32> to vector<16x128xf32>
    %21 = arith.addf %18, %20 : vector<16x128xf32>
    %22 = arith.mulf %16, %0 : vector<16x128xf32>
    %23 = arith.addf %22, %21 : vector<16x128xf32>
    %c0_18 = arith.constant 0 : index
    %c0_19 = arith.constant 0 : index
    %24 = vector.load %arg9[%c0_18, %c0_19] : memref<128x128xf32, #tpu.memory_space<vmem>>, vector<128x128xf32>
    %cst_20 = arith.constant dense<0.000000e+00> : vector<16x128xf32>
    %25 = tpu.matmul %0, %24, %cst_20 {dimension_numbers = #tpu.dot_dimension_numbers<[1], [0], [0], [1], [0, 0, 1, 1], [], []>} : vector<16x128xf32>, vector<128x128xf32>, vector<16x128xf32> -> vector<16x128xf32>
    %c0_21 = arith.constant 0 : index
    %c0_22 = arith.constant 0 : index
    %26 = vector.load %arg10[%c0_21, %c0_22] : memref<1x128xf32, #tpu.memory_space<vmem>>, vector<1x128xf32>
    %27 = vector.broadcast %26 : vector<1x128xf32> to vector<16x128xf32>
    %28 = arith.addf %25, %27 : vector<16x128xf32>
    %c0_23 = arith.constant 0 : index
    %c0_24 = arith.constant 0 : index
    %29 = vector.load %arg11[%c0_23, %c0_24] : memref<128x128xf32, #tpu.memory_space<vmem>>, vector<128x128xf32>
    %cst_25 = arith.constant dense<0.000000e+00> : vector<16x128xf32>
    %30 = tpu.matmul %28, %29, %cst_25 {dimension_numbers = #tpu.dot_dimension_numbers<[1], [0], [0], [1], [0, 0, 1, 1], [], []>} : vector<16x128xf32>, vector<128x128xf32>, vector<16x128xf32> -> vector<16x128xf32>
    %c0_26 = arith.constant 0 : index
    %c0_27 = arith.constant 0 : index
    %31 = vector.load %arg12[%c0_26, %c0_27] : memref<1x128xf32, #tpu.memory_space<vmem>>, vector<1x128xf32>
    %32 = vector.broadcast %31 : vector<1x128xf32> to vector<16x128xf32>
    %33 = arith.addf %30, %32 : vector<16x128xf32>
    %34 = arith.negf %33 : vector<16x128xf32>
    %35 = math.exp %34 : vector<16x128xf32>
    %cst_28 = arith.constant 1.000000e+00 : f32
    %36 = vector.broadcast %cst_28 : f32 to vector<16x128xf32>
    %37 = arith.addf %36, %35 : vector<16x128xf32>
    %38 = arith.divf %36, %37 : vector<16x128xf32>
    %c0_29 = arith.constant 0 : index
    %c0_30 = arith.constant 0 : index
    %39 = vector.load %arg13[%c0_29, %c0_30] : memref<128x128xf32, #tpu.memory_space<vmem>>, vector<128x128xf32>
    %cst_31 = arith.constant dense<0.000000e+00> : vector<16x128xf32>
    %40 = tpu.matmul %28, %39, %cst_31 {dimension_numbers = #tpu.dot_dimension_numbers<[1], [0], [0], [1], [0, 0, 1, 1], [], []>} : vector<16x128xf32>, vector<128x128xf32>, vector<16x128xf32> -> vector<16x128xf32>
    %c0_32 = arith.constant 0 : index
    %c0_33 = arith.constant 0 : index
    %41 = vector.load %arg14[%c0_32, %c0_33] : memref<1x128xf32, #tpu.memory_space<vmem>>, vector<1x128xf32>
    %42 = vector.broadcast %41 : vector<1x128xf32> to vector<16x128xf32>
    %43 = arith.addf %40, %42 : vector<16x128xf32>
    %44 = arith.mulf %38, %1 : vector<16x128xf32>
    %45 = arith.addf %44, %43 : vector<16x128xf32>
    %c0_34 = arith.constant 0 : index
    %c0_35 = arith.constant 0 : index
    %46 = vector.load %arg15[%c0_34, %c0_35] : memref<128x128xf32, #tpu.memory_space<vmem>>, vector<128x128xf32>
    %cst_36 = arith.constant dense<0.000000e+00> : vector<16x128xf32>
    %47 = tpu.matmul %45, %46, %cst_36 {dimension_numbers = #tpu.dot_dimension_numbers<[1], [0], [0], [1], [0, 0, 1, 1], [], []>} : vector<16x128xf32>, vector<128x128xf32>, vector<16x128xf32> -> vector<16x128xf32>
    %c0_37 = arith.constant 0 : index
    %c0_38 = arith.constant 0 : index
    %48 = vector.load %arg16[%c0_37, %c0_38] : memref<1x128xf32, #tpu.memory_space<vmem>>, vector<1x128xf32>
    %49 = vector.broadcast %48 : vector<1x128xf32> to vector<16x128xf32>
    %50 = arith.addf %47, %49 : vector<16x128xf32>
    %c0_39 = arith.constant 0 : index
    %c0_40 = arith.constant 0 : index
    %51 = vector.load %arg17[%c0_39, %c0_40] : memref<128x128xf32, #tpu.memory_space<vmem>>, vector<128x128xf32>
    %cst_41 = arith.constant dense<0.000000e+00> : vector<16x128xf32>
    %52 = tpu.matmul %23, %51, %cst_41 {dimension_numbers = #tpu.dot_dimension_numbers<[1], [0], [0], [1], [0, 0, 1, 1], [], []>} : vector<16x128xf32>, vector<128x128xf32>, vector<16x128xf32> -> vector<16x128xf32>
    %c0_42 = arith.constant 0 : index
    %c0_43 = arith.constant 0 : index
    %53 = vector.load %arg18[%c0_42, %c0_43] : memref<128x128xf32, #tpu.memory_space<vmem>>, vector<128x128xf32>
    %cst_44 = arith.constant dense<0.000000e+00> : vector<16x128xf32>
    %54 = tpu.matmul %50, %53, %cst_44 {dimension_numbers = #tpu.dot_dimension_numbers<[1], [0], [0], [1], [0, 0, 1, 1], [], []>} : vector<16x128xf32>, vector<128x128xf32>, vector<16x128xf32> -> vector<16x128xf32>
    %55 = arith.addf %52, %54 : vector<16x128xf32>
    %c0_45 = arith.constant 0 : index
    %c0_46 = arith.constant 0 : index
    %56 = vector.load %arg19[%c0_45, %c0_46] : memref<1x128xf32, #tpu.memory_space<vmem>>, vector<1x128xf32>
    %57 = vector.broadcast %56 : vector<1x128xf32> to vector<16x128xf32>
    %58 = arith.addf %55, %57 : vector<16x128xf32>
    %59 = arith.negf %58 : vector<16x128xf32>
    %60 = math.exp %59 : vector<16x128xf32>
    %cst_47 = arith.constant 1.000000e+00 : f32
    %61 = vector.broadcast %cst_47 : f32 to vector<16x128xf32>
    %62 = arith.addf %61, %60 : vector<16x128xf32>
    %63 = arith.divf %61, %62 : vector<16x128xf32>
    %64 = arith.mulf %63, %23 : vector<16x128xf32>
    %cst_48 = arith.constant 1.000000e+00 : f32
    %65 = vector.broadcast %cst_48 : f32 to vector<16x128xf32>
    %66 = arith.subf %65, %63 : vector<16x128xf32>
    %67 = arith.mulf %66, %50 : vector<16x128xf32>
    %68 = arith.addf %64, %67 : vector<16x128xf32>
    %c0_49 = arith.constant 0 : index
    %c0_50 = arith.constant 0 : index
    %69 = vector.load %arg20[%c0_49, %c0_50] : memref<16x128xf32, #tpu.memory_space<vmem>>, vector<16x128xf32>
    tpu.vector_store %arg20[%c0_49, %c0_50], %68 {strides = array<i32>} : memref<16x128xf32, #tpu.memory_space<vmem>>, vector<16x128xf32>,
    return
  }
  func.func @transform_0(%arg0: i32) -> (i32, i32) {
    %c0_i32 = arith.constant 0 : i32
    %c0_i32_0 = arith.constant 0 : i32
    return %arg0, %c0_i32 : i32, i32
  }
  func.func @transform_1(%arg0: i32) -> (i32, i32) {
    %c0_i32 = arith.constant 0 : i32
    %c0_i32_0 = arith.constant 0 : i32
    return %arg0, %c0_i32 : i32, i32
  }
  func.func @transform_2(%arg0: i32) -> (i32, i32) {
    %c0_i32 = arith.constant 0 : i32
    %c0_i32_0 = arith.constant 0 : i32
    %c0_i32_1 = arith.constant 0 : i32
    return %c0_i32, %c0_i32_0 : i32, i32
  }
  func.func @transform_3(%arg0: i32) -> (i32, i32) {
    %c0_i32 = arith.constant 0 : i32
    %c0_i32_0 = arith.constant 0 : i32
    %c0_i32_1 = arith.constant 0 : i32
    return %c0_i32, %c0_i32_0 : i32, i32
  }
  func.func @transform_4(%arg0: i32) -> (i32, i32) {
    %c0_i32 = arith.constant 0 : i32
    %c0_i32_0 = arith.constant 0 : i32
    %c0_i32_1 = arith.constant 0 : i32
    return %c0_i32, %c0_i32_0 : i32, i32
  }
  func.func @transform_5(%arg0: i32) -> (i32, i32) {
    %c0_i32 = arith.constant 0 : i32
    %c0_i32_0 = arith.constant 0 : i32
    %c0_i32_1 = arith.constant 0 : i32
    return %c0_i32, %c0_i32_0 : i32, i32
  }
  func.func @transform_6(%arg0: i32) -> (i32, i32) {
    %c0_i32 = arith.constant 0 : i32
    %c0_i32_0 = arith.constant 0 : i32
    %c0_i32_1 = arith.constant 0 : i32
    return %c0_i32, %c0_i32_0 : i32, i32
  }
  func.func @transform_7(%arg0: i32) -> (i32, i32) {
    %c0_i32 = arith.constant 0 : i32
    %c0_i32_0 = arith.constant 0 : i32
    %c0_i32_1 = arith.constant 0 : i32
    return %c0_i32, %c0_i32_0 : i32, i32
  }
  func.func @transform_8(%arg0: i32) -> (i32, i32) {
    %c0_i32 = arith.constant 0 : i32
    %c0_i32_0 = arith.constant 0 : i32
    %c0_i32_1 = arith.constant 0 : i32
    return %c0_i32, %c0_i32_0 : i32, i32
  }
  func.func @transform_9(%arg0: i32) -> (i32, i32) {
    %c0_i32 = arith.constant 0 : i32
    %c0_i32_0 = arith.constant 0 : i32
    %c0_i32_1 = arith.constant 0 : i32
    return %c0_i32, %c0_i32_0 : i32, i32
  }
  func.func @transform_10(%arg0: i32) -> (i32, i32) {
    %c0_i32 = arith.constant 0 : i32
    %c0_i32_0 = arith.constant 0 : i32
    %c0_i32_1 = arith.constant 0 : i32
    return %c0_i32, %c0_i32_0 : i32, i32
  }
  func.func @transform_11(%arg0: i32) -> (i32, i32) {
    %c0_i32 = arith.constant 0 : i32
    %c0_i32_0 = arith.constant 0 : i32
    %c0_i32_1 = arith.constant 0 : i32
    return %c0_i32, %c0_i32_0 : i32, i32
  }
  func.func @transform_12(%arg0: i32) -> (i32, i32) {
    %c0_i32 = arith.constant 0 : i32
    %c0_i32_0 = arith.constant 0 : i32
    %c0_i32_1 = arith.constant 0 : i32
    return %c0_i32, %c0_i32_0 : i32, i32
  }
  func.func @transform_13(%arg0: i32) -> (i32, i32) {
    %c0_i32 = arith.constant 0 : i32
    %c0_i32_0 = arith.constant 0 : i32
    %c0_i32_1 = arith.constant 0 : i32
    return %c0_i32, %c0_i32_0 : i32, i32
  }
  func.func @transform_14(%arg0: i32) -> (i32, i32) {
    %c0_i32 = arith.constant 0 : i32
    %c0_i32_0 = arith.constant 0 : i32
    %c0_i32_1 = arith.constant 0 : i32
    return %c0_i32, %c0_i32_0 : i32, i32
  }
  func.func @transform_15(%arg0: i32) -> (i32, i32) {
    %c0_i32 = arith.constant 0 : i32
    %c0_i32_0 = arith.constant 0 : i32
    %c0_i32_1 = arith.constant 0 : i32
    return %c0_i32, %c0_i32_0 : i32, i32
  }
  func.func @transform_16(%arg0: i32) -> (i32, i32) {
    %c0_i32 = arith.constant 0 : i32
    %c0_i32_0 = arith.constant 0 : i32
    %c0_i32_1 = arith.constant 0 : i32
    return %c0_i32, %c0_i32_0 : i32, i32
  }
  func.func @transform_17(%arg0: i32) -> (i32, i32) {
    %c0_i32 = arith.constant 0 : i32
    %c0_i32_0 = arith.constant 0 : i32
    %c0_i32_1 = arith.constant 0 : i32
    return %c0_i32, %c0_i32_0 : i32, i32
  }
  func.func @transform_18(%arg0: i32) -> (i32, i32) {
    %c0_i32 = arith.constant 0 : i32
    %c0_i32_0 = arith.constant 0 : i32
    %c0_i32_1 = arith.constant 0 : i32
    return %c0_i32, %c0_i32_0 : i32, i32
  }
  func.func @transform_19(%arg0: i32) -> (i32, i32) {
    %c0_i32 = arith.constant 0 : i32
    %c0_i32_0 = arith.constant 0 : i32
    return %arg0, %c0_i32 : i32, i32
  }
}

</mosaic_0001>

<bundles_post_ra>
// kernel: tpu_custom_call.1
= control target key start
LH: loop header
LB: loop body
LE: loop exit
PB: predicated region body
PF: predicated region fallthrough
CT: control target
= control target key end

     0   :  { %s2647_s0 = inlined_call_operand.hbm [shape: f32[16,128], index: 0, kind: input, shape index: {}]   ;;  %s2648_s1 = inlined_call_operand.hbm [shape: f32[16,128], index: 1, kind: input, shape index: {}]   ;;  %s2649_s2 = inlined_call_operand.hbm [shape: f32[128,128], index: 2, kind: input, shape index: {}]   ;;  %s2650_s3 = inlined_call_operand.vmem [shape: f32[1,128], index: 3, kind: input, shape index: {}]   ;;  %s2651_s4 = inlined_call_operand.hbm [shape: f32[128,128], index: 4, kind: input, shape index: {}]   ;;  %s2652_s5 = inlined_call_operand.vmem [shape: f32[1,128], index: 5, kind: input, shape index: {}]   ;;  %s2653_s6 = inlined_call_operand.hbm [shape: f32[128,128], index: 6, kind: input, shape index: {}]   ;;  %s2654_s7 = inlined_call_operand.vmem [shape: f32[1,128], index: 7, kind: input, shape index: {}]   ;;  %s2655_s8 = inlined_call_operand.hbm [shape: f32[128,128], index: 8, kind: input, shape index: {}]   ;;  %s2656_s9 = inlined_call_operand.vmem [shape: f32[1,128], index: 9, kind: input, shape index: {}]   ;;  %s2657_s10 = inlined_call_operand.hbm [shape: f32[128,128], index: 10, kind: input, shape index: {}]   ;;  %s2658_s11 = inlined_call_operand.vmem [shape: f32[1,128], index: 11, kind: input, shape index: {}]   ;;  %s2659_s12 = inlined_call_operand.hbm [shape: f32[128,128], index: 12, kind: input, shape index: {}]   ;;  %s2660_s13 = inlined_call_operand.vmem [shape: f32[1,128], index: 13, kind: input, shape index: {}]   ;;  %s2661_s14 = inlined_call_operand.hbm [shape: f32[128,128], index: 14, kind: input, shape index: {}]   ;;  %s2662_s15 = inlined_call_operand.vmem [shape: f32[1,128], index: 15, kind: input, shape index: {}]   ;;  %s2663_s16 = inlined_call_operand.hbm [shape: f32[128,128], index: 16, kind: input, shape index: {}]   ;;  %s2664_s17 = inlined_call_operand.hbm [shape: f32[128,128], index: 17, kind: input, shape index: {}]   ;;  %s2665_s18 = inlined_call_operand.vmem [shape: f32[1,128], index: 18, kind: input, shape index: {}]   ;;  %s2666_s19 = inlined_call_operand.hbm [shape: f32[16,128], index: 19, kind: output, shape index: {}]  }
   0x1   :  { %2671 = sst [smem:[#allocation28_spill]] %s2647_s0 }
   0x2   :  { %2672 = sst [smem:[#allocation29_spill]] %s2648_s1 }
   0x3   :  { %2673 = sst [smem:[#allocation30_spill]] %s2649_s2 }
   0x4   :  { %2674 = sst [smem:[#allocation31_spill]] %s2650_s3 }
   0x5   :  { %2675 = sst [smem:[#allocation32_spill]] %s2666_s19 }
   0x6   :  { %24 = vsyncpa [#allocation3], 0 }
   0x7   :  { %25 = vsyncpa [#allocation6], 0 }
   0x8   :  { %26 = vsyncpa [#allocation9], 0 }
   0x9   :  { %27 = vsyncpa [#allocation12], 0 }
   0xa   :  { %28 = vsyncpa [#allocation15], 0 }
   0xb   :  { %29 = vsyncpa [#allocation18], 0 }
   0xc   :  { %30 = vsyncpa [#allocation4], 0  ;;  %s2266_s0 = smov [#allocation5]   ;;  %s2267_s20 = smov [#allocation8]  }
   0xd   :  { %s48_s30 = sshll.u32 %s2266_s0, 4  ;;  %s74_s21 = sshll.u32 %s2267_s20, 4  ;;  %s49_s30 = int_to_ptr.vmem [resolvable:$true] %s48_s30  ;;  %s2380_s21 = int_to_ptr.vmem [resolvable:$true] %s74_s21 }
   0xe   :  { %s2676_s2 = sld [smem:[#allocation29_spill]] }
  0x14   :  { %s1988_s23 = scalar_lea.hbm %s2676_s2, 256 }
  0x15   :  { %p1989_p0 = scmp.ne.s32.totalorder %s2676_s2, %s1988_s23  ;;  %p1992_p1 = scmp.lt.u32.totalorder %s1988_s23, %s2676_s2 }
  0x17   :  { %p1994_p2 = pnand %p1992_p1, %p1989_p0 }
  0x19   :  { %1997 = shalt.err (!%p1994_p2)
}
  0x1a   :  { %s1998_s27 = scalar_lea.vmem %s49_s30, 256  ;;  %p2003_p4 = scmp.lt.s32.totalorder %s49_s30, %s49_s30 }
  0x1b   :  { %p1999_p3 = scmp.ne.s32.totalorder %s49_s30, %s1998_s27  ;;  %p2004_p5 = scmp.lt.s32.totalorder %s1998_s27, %s1998_s27 }
  0x1d   :  { %p2005_p6 = por %p2004_p5, %p2003_p4 }
  0x1f   :  { %p2006_p7 = pnand %p2005_p6, %p1999_p3 }
  0x21   :  { %2009 = shalt.err (!%p2006_p7)
}
  0x22   :  { %s2268_s28 = smov 128   ;;  %s2269_s29 = smov 8  }
  0x23   :  { %54 = dma.hbm_to_vmem [thread:$0]  %s2676_s2, 256, %s49_s30, [#allocation6], %s2268_s28, %s2268_s28, %s2269_s29  }
  0x24   :  { %s2010_s23 = scalar_lea.hbm %s2651_s4, 2048 }
  0x25   :  { %p2011_p8 = scmp.ne.s32.totalorder %s2651_s4, %s2010_s23  ;;  %p2014_p9 = scmp.lt.u32.totalorder %s2010_s23, %s2651_s4 }
  0x27   :  { %p2016_p10 = pnand %p2014_p9, %p2011_p8 }
  0x29   :  { %2019 = shalt.err (!%p2016_p10)
}
  0x2a   :  { %s2020_s27 = scalar_lea.vmem %s2380_s21, 2048  ;;  %p2025_p12 = scmp.lt.s32.totalorder %s2380_s21, %s2380_s21 }
  0x2b   :  { %p2021_p11 = scmp.ne.s32.totalorder %s2380_s21, %s2020_s27  ;;  %p2026_p13 = scmp.lt.s32.totalorder %s2020_s27, %s2020_s27 }
  0x2d   :  { %p2027_p0 = por %p2026_p13, %p2025_p12 }
  0x2f   :  { %p2028_p1 = pnand %p2027_p0, %p2021_p11 }
  0x31   :  { %2031 = shalt.err (!%p2028_p1)
}
  0x32   :  { %80 = dma.hbm_to_vmem [thread:$0]  %s2651_s4, 2048, %s2380_s21, [#allocation9], %s2268_s28, %s2268_s28, %s2269_s29  }
  0x33   :  { %s2270_s0 = smov [#allocation11]   ;;  %s2271_s1 = smov [#allocation14]  }
  0x34   :  { %s102_s20 = sshll.u32 %s2270_s0, 4  ;;  %s130_s22 = sshll.u32 %s2271_s1, 4  ;;  %s103_s20 = int_to_ptr.vmem [resolvable:$true] %s102_s20  ;;  %s2417_s22 = int_to_ptr.vmem [resolvable:$true] %s130_s22 }
  0x35   :  { %s2032_s25 = scalar_lea.hbm %s2655_s8, 2048 }
  0x36   :  { %p2033_p2 = scmp.ne.s32.totalorder %s2655_s8, %s2032_s25  ;;  %p2036_p3 = scmp.lt.u32.totalorder %s2032_s25, %s2655_s8 }
  0x38   :  { %p2038_p4 = pnand %p2036_p3, %p2033_p2 }
  0x3a   :  { %2041 = shalt.err (!%p2038_p4)
}
  0x3b   :  { %s2042_s4 = scalar_lea.vmem %s103_s20, 2048  ;;  %p2047_p6 = scmp.lt.s32.totalorder %s103_s20, %s103_s20 }
  0x3c   :  { %p2043_p5 = scmp.ne.s32.totalorder %s103_s20, %s2042_s4  ;;  %p2048_p7 = scmp.lt.s32.totalorder %s2042_s4, %s2042_s4 }
  0x3e   :  { %p2049_p8 = por %p2048_p7, %p2047_p6 }
  0x40   :  { %p2050_p9 = pnand %p2049_p8, %p2043_p5 }
  0x42   :  { %2053 = shalt.err (!%p2050_p9)
}
  0x43   :  { %108 = dma.hbm_to_vmem [thread:$0]  %s2655_s8, 2048, %s103_s20, [#allocation12], %s2268_s28, %s2268_s28, %s2269_s29  }
  0x44   :  { %s2054_s19 = scalar_lea.hbm %s2659_s12, 2048 }
  0x45   :  { %p2055_p10 = scmp.ne.s32.totalorder %s2659_s12, %s2054_s19  ;;  %p2058_p11 = scmp.lt.u32.totalorder %s2054_s19, %s2659_s12 }
  0x47   :  { %p2060_p12 = pnand %p2058_p11, %p2055_p10 }
  0x49   :  { %2063 = shalt.err (!%p2060_p12)
}
  0x4a   :  { %s2064_s3 = scalar_lea.vmem %s2417_s22, 2048  ;;  %p2069_p0 = scmp.lt.s32.totalorder %s2417_s22, %s2417_s22 }
  0x4b   :  { %p2065_p13 = scmp.ne.s32.totalorder %s2417_s22, %s2064_s3  ;;  %p2070_p1 = scmp.lt.s32.totalorder %s2064_s3, %s2064_s3 }
  0x4d   :  { %p2071_p2 = por %p2070_p1, %p2069_p0 }
  0x4f   :  { %p2072_p3 = pnand %p2071_p2, %p2065_p13 }
  0x51   :  { %2075 = shalt.err (!%p2072_p3)
}
  0x52   :  { %136 = dma.hbm_to_vmem [thread:$0]  %s2659_s12, 2048, %s2417_s22, [#allocation15], %s2268_s28, %s2268_s28, %s2269_s29  }
  0x53   :  { %s2272_s26 = smov [#allocation17]   ;;  %s2273_s4 = smov [#allocation2]  }
  0x54   :  { %s158_s27 = sshll.u32 %s2272_s26, 4  ;;  %s36_s21 = sshll.u32 %s2273_s4, 4  ;;  %s159_s27 = int_to_ptr.vmem [resolvable:$true] %s158_s27  ;;  %s2454_s21 = int_to_ptr.vmem [resolvable:$true] %s36_s21 }
  0x55   :  { %s2076_s0 = scalar_lea.hbm %s2663_s16, 2048 }
  0x56   :  { %p2077_p4 = scmp.ne.s32.totalorder %s2663_s16, %s2076_s0  ;;  %p2080_p5 = scmp.lt.u32.totalorder %s2076_s0, %s2663_s16 }
  0x58   :  { %p2082_p6 = pnand %p2080_p5, %p2077_p4 }
  0x5a   :  { %2085 = shalt.err (!%p2082_p6)
}
  0x5b   :  { %s2086_s12 = scalar_lea.vmem %s159_s27, 2048  ;;  %p2091_p8 = scmp.lt.s32.totalorder %s159_s27, %s159_s27 }
  0x5c   :  { %p2087_p7 = scmp.ne.s32.totalorder %s159_s27, %s2086_s12  ;;  %p2092_p9 = scmp.lt.s32.totalorder %s2086_s12, %s2086_s12 }
  0x5e   :  { %p2093_p10 = por %p2092_p9, %p2091_p8 }
  0x60   :  { %p2094_p11 = pnand %p2093_p10, %p2087_p7 }
  0x62   :  { %2097 = shalt.err (!%p2094_p11)
}
  0x63   :  { %164 = dma.hbm_to_vmem [thread:$0]  %s2663_s16, 2048, %s159_s27, [#allocation18], %s2268_s28, %s2268_s28, %s2269_s29  }
  0x64   :  { %s2677_s20 = sld [smem:[#allocation28_spill]] }
  0x6a   :  { %s2098_s26 = scalar_lea.hbm %s2677_s20, 256 }
  0x6b   :  { %p2099_p12 = scmp.ne.s32.totalorder %s2677_s20, %s2098_s26  ;;  %p2102_p13 = scmp.lt.u32.totalorder %s2098_s26, %s2677_s20 }
  0x6d   :  { %p2104_p0 = pnand %p2102_p13, %p2099_p12 }
  0x6f   :  { %2107 = shalt.err (!%p2104_p0)
}
  0x70   :  { %s2108_s19 = scalar_lea.vmem %s2454_s21, 256  ;;  %p2113_p2 = scmp.lt.s32.totalorder %s2454_s21, %s2454_s21 }
  0x71   :  { %p2109_p1 = scmp.ne.s32.totalorder %s2454_s21, %s2108_s19  ;;  %p2114_p3 = scmp.lt.s32.totalorder %s2108_s19, %s2108_s19 }
  0x73   :  { %p2115_p4 = por %p2114_p3, %p2113_p2 }
  0x75   :  { %p2116_p5 = pnand %p2115_p4, %p2109_p1 }
  0x77   :  { %2119 = shalt.err (!%p2116_p5)
}
  0x78   :  { %42 = dma.hbm_to_vmem [thread:$0]  %s2677_s20, 256, %s2454_s21, [#allocation3], %s2268_s28, %s2268_s28, %s2269_s29  }
  0x79   :  { %s2274_s1 = smov [#allocation7]   ;;  %s2275_s24 = smov [#allocation10]  }
  0x7a   :  { %s60_s23 = sshll.u32 %s2274_s1, 4  ;;  %s88_s12 = sshll.u32 %s2275_s24, 4  ;;  %s61_s23 = int_to_ptr.vmem [resolvable:$true] %s60_s23  ;;  %s2491_s12 = int_to_ptr.vmem [resolvable:$true] %s88_s12 }
  0x7b   :  { %s2678_s3 = sld [smem:[#allocation30_spill]] }
  0x81   :  { %s2120_s8 = scalar_lea.hbm %s2678_s3, 2048 }
  0x82   :  { %p2121_p6 = scmp.ne.s32.totalorder %s2678_s3, %s2120_s8  ;;  %p2124_p7 = scmp.lt.u32.totalorder %s2120_s8, %s2678_s3 }
  0x84   :  { %p2126_p8 = pnand %p2124_p7, %p2121_p6 }
  0x86   :  { %2129 = shalt.err (!%p2126_p8)
}
  0x87   :  { %s2130_s21 = scalar_lea.vmem %s61_s23, 2048  ;;  %p2135_p10 = scmp.lt.s32.totalorder %s61_s23, %s61_s23 }
  0x88   :  { %p2131_p9 = scmp.ne.s32.totalorder %s61_s23, %s2130_s21  ;;  %p2136_p11 = scmp.lt.s32.totalorder %s2130_s21, %s2130_s21 }
  0x8a   :  { %p2137_p12 = por %p2136_p11, %p2135_p10 }
  0x8c   :  { %p2138_p13 = pnand %p2137_p12, %p2131_p9 }
  0x8e   :  { %2141 = shalt.err (!%p2138_p13)
}
  0x8f   :  { %66 = dma.hbm_to_vmem [thread:$0]  %s2678_s3, 2048, %s61_s23, [#allocation6], %s2268_s28, %s2268_s28, %s2269_s29  }
  0x90   :  { %s2142_s27 = scalar_lea.hbm %s2653_s6, 2048 }
  0x91   :  { %p2143_p0 = scmp.ne.s32.totalorder %s2653_s6, %s2142_s27  ;;  %p2146_p1 = scmp.lt.u32.totalorder %s2142_s27, %s2653_s6 }
  0x93   :  { %p2148_p2 = pnand %p2146_p1, %p2143_p0 }
  0x95   :  { %2151 = shalt.err (!%p2148_p2)
}
  0x96   :  { %s2152_s8 = scalar_lea.vmem %s2491_s12, 2048  ;;  %p2157_p4 = scmp.lt.s32.totalorder %s2491_s12, %s2491_s12 }
  0x97   :  { %p2153_p3 = scmp.ne.s32.totalorder %s2491_s12, %s2152_s8  ;;  %p2158_p5 = scmp.lt.s32.totalorder %s2152_s8, %s2152_s8 }
  0x99   :  { %p2159_p6 = por %p2158_p5, %p2157_p4 }
  0x9b   :  { %p2160_p7 = pnand %p2159_p6, %p2153_p3 }
  0x9d   :  { %2163 = shalt.err (!%p2160_p7)
}
  0x9e   :  { %94 = dma.hbm_to_vmem [thread:$0]  %s2653_s6, 2048, %s2491_s12, [#allocation9], %s2268_s28, %s2268_s28, %s2269_s29  }
  0x9f   :  { %s2276_s26 = smov [#allocation13]   ;;  %s2277_s30 = smov [#allocation16]  }
  0xa0   :  { %s116_s4 = sshll.u32 %s2276_s26, 4  ;;  %s144_s2 = sshll.u32 %s2277_s30, 4  ;;  %s117_s4 = int_to_ptr.vmem [resolvable:$true] %s116_s4  ;;  %s2528_s2 = int_to_ptr.vmem [resolvable:$true] %s144_s2 }
  0xa1   :  { %s2164_s0 = scalar_lea.hbm %s2657_s10, 2048 }
  0xa2   :  { %p2165_p8 = scmp.ne.s32.totalorder %s2657_s10, %s2164_s0  ;;  %p2168_p9 = scmp.lt.u32.totalorder %s2164_s0, %s2657_s10 }
  0xa4   :  { %p2170_p10 = pnand %p2168_p9, %p2165_p8 }
  0xa6   :  { %2173 = shalt.err (!%p2170_p10)
}
  0xa7   :  { %s2174_s6 = scalar_lea.vmem %s117_s4, 2048  ;;  %p2179_p12 = scmp.lt.s32.totalorder %s117_s4, %s117_s4 }
  0xa8   :  { %p2175_p11 = scmp.ne.s32.totalorder %s117_s4, %s2174_s6  ;;  %p2180_p13 = scmp.lt.s32.totalorder %s2174_s6, %s2174_s6 }
  0xaa   :  { %p2181_p0 = por %p2180_p13, %p2179_p12 }
  0xac   :  { %p2182_p1 = pnand %p2181_p0, %p2175_p11 }
  0xae   :  { %2185 = shalt.err (!%p2182_p1)
}
  0xaf   :  { %122 = dma.hbm_to_vmem [thread:$0]  %s2657_s10, 2048, %s117_s4, [#allocation12], %s2268_s28, %s2268_s28, %s2269_s29  }
  0xb0   :  { %s2186_s8 = scalar_lea.hbm %s2661_s14, 2048 }
  0xb1   :  { %p2187_p2 = scmp.ne.s32.totalorder %s2661_s14, %s2186_s8  ;;  %p2190_p3 = scmp.lt.u32.totalorder %s2186_s8, %s2661_s14 }
  0xb3   :  { %p2192_p4 = pnand %p2190_p3, %p2187_p2 }
  0xb5   :  { %2195 = shalt.err (!%p2192_p4)
}
  0xb6   :  { %s2196_s21 = scalar_lea.vmem %s2528_s2, 2048  ;;  %p2201_p6 = scmp.lt.s32.totalorder %s2528_s2, %s2528_s2 }
  0xb7   :  { %p2197_p5 = scmp.ne.s32.totalorder %s2528_s2, %s2196_s21  ;;  %p2202_p7 = scmp.lt.s32.totalorder %s2196_s21, %s2196_s21 }
  0xb9   :  { %p2203_p8 = por %p2202_p7, %p2201_p6 }
  0xbb   :  { %p2204_p9 = pnand %p2203_p8, %p2197_p5 }
  0xbd   :  { %2207 = shalt.err (!%p2204_p9)
}
  0xbe   :  { %150 = dma.hbm_to_vmem [thread:$0]  %s2661_s14, 2048, %s2528_s2, [#allocation15], %s2268_s28, %s2268_s28, %s2269_s29  }
  0xbf   :  { %s2278_s20 = smov [#allocation19]   ;;  %s2208_s27 = scalar_lea.hbm %s2664_s17, 2048 }
  0xc0   :  { %s170_s0 = sshll.u32 %s2278_s20, 4  ;;  %p2209_p10 = scmp.ne.s32.totalorder %s2664_s17, %s2208_s27  ;;  %s171_s0 = int_to_ptr.vmem [resolvable:$true] %s170_s0 }
  0xc1   :  { %p2212_p11 = scmp.lt.u32.totalorder %s2208_s27, %s2664_s17 }
  0xc3   :  { %p2214_p12 = pnand %p2212_p11, %p2209_p10 }
  0xc5   :  { %2217 = shalt.err (!%p2214_p12)
}
  0xc6   :  { %s2218_s22 = scalar_lea.vmem %s171_s0, 2048  ;;  %p2223_p0 = scmp.lt.s32.totalorder %s171_s0, %s171_s0 }
  0xc7   :  { %p2219_p13 = scmp.ne.s32.totalorder %s171_s0, %s2218_s22  ;;  %p2224_p1 = scmp.lt.s32.totalorder %s2218_s22, %s2218_s22 }
  0xc9   :  { %p2225_p2 = por %p2224_p1, %p2223_p0 }
  0xcb   :  { %p2226_p3 = pnand %p2225_p2, %p2219_p13 }
  0xcd   :  { %2229 = shalt.err (!%p2226_p3)
}
  0xce   :  { %176 = dma.hbm_to_vmem [thread:$0]  %s2664_s17, 2048, %s171_s0, [#allocation18], %s2268_s28, %s2268_s28, %s2269_s29  }
  0xcf   :  { %2252 = dma.done.wait [#allocation3], 256  }
  0xd0   :  { %2253 = vsyncadd [#allocation3], 4294967040 }
  0xd1   :  { %2254 = dma.done.wait [#allocation6], 2304  }
  0xd2   :  { %2255 = vsyncadd [#allocation6], 4294964992 }
  0xd3   :  { %2256 = dma.done.wait [#allocation9], 4096  }
  0xd4   :  { %2257 = vsyncadd [#allocation9], 4294963200 }
  0xd5   :  { %2258 = dma.done.wait [#allocation12], 4096  }
  0xd6   :  { %2259 = vsyncadd [#allocation12], 4294963200 }
  0xd7   :  { %2260 = dma.done.wait [#allocation15], 4096  }
  0xd8   :  { %2261 = vsyncadd [#allocation15], 4294963200 }
  0xd9   :  { %2262 = dma.done.wait [#allocation18], 4096  }
  0xda   :  { %2263 = vsyncadd [#allocation18], 4294963200  ;;  %v216_v0 = vld [vmem:[#allocation7] sm:$0xff]  ;;  %v217_v1 = vld [vmem:[#allocation7 + $0x8] sm:$0xff]  ;;  %s2679_s8 = sld [smem:[#allocation31_spill]] }
  0xdb   :  { %v218_v2 = vld [vmem:[#allocation7 + $0x10] sm:$0xff]  ;;  %v1660_v3 = vpack.c.bf16 %v217_v1, %v216_v0  ;;  %v219_v4 = vld [vmem:[#allocation7 + $0x18] sm:$0xff]  ;;  %v220_v6 = vld [vmem:[#allocation7 + $0x20] sm:$0xff] }
  0xdc   :  { %v1664_v5 = vpack.c.bf16 %v219_v4, %v218_v2  ;;  %v221_v7 = vld [vmem:[#allocation7 + $0x28] sm:$0xff]  ;;  %v222_v9 = vld [vmem:[#allocation7 + $0x30] sm:$0xff]  ;;  %v223_v11 = vld [vmem:[#allocation7 + $0x38] sm:$0xff] }
  0xdd   :  { %1661 = vmatprep.subr.bf16.mxu0 %v1660_v3  ;;  %v1668_v8 = vpack.c.bf16 %v221_v7, %v220_v6  ;;  %v2580_v10 = vld [vmem:[#allocation5] sm:$0xff]  ;;  %v314_v12 = vld [vmem:[#allocation8] sm:$0xff]  ;;  %v315_v13 = vld [vmem:[#allocation8 + $0x8] sm:$0xff]  ;;  %v1672_v19 = vpack.c.bf16 %v223_v11, %v222_v9 }
  0xde   :  { %1663 = vmatpush3.bf16.msra.mxu0 %v1660_v3  ;;  %1377 = vmatprep.mubr.f32.mxu0 %v2580_v10  ;;  %v1692_v14 = vpack.c.bf16 %v315_v13, %v314_v12  ;;  %v316_v15 = vld [vmem:[#allocation8 + $0x10] sm:$0xff]  ;;  %v317_v16 = vld [vmem:[#allocation8 + $0x18] sm:$0xff]  ;;  %v318_v18 = vld [vmem:[#allocation8 + $0x20] sm:$0xff] }
  0xdf   :  { %1665 = vmatprep.subr.bf16.mxu0 %v1664_v5  ;;  %v1696_v17 = vpack.c.bf16 %v317_v16, %v316_v15  ;;  %v319_v20 = vld [vmem:[#allocation8 + $0x28] sm:$0xff]  ;;  %v224_v21 = vld [vmem:[#allocation7 + $0x40] sm:$0xff]  ;;  %v320_v24 = vld [vmem:[#allocation8 + $0x30] sm:$0xff] }
  0xe0   :  { %1693 = vmatprep.subr.bf16.mxu1 %v1692_v14  ;;  %v225_v22 = vld [vmem:[#allocation7 + $0x48] sm:$0xff]  ;;  %v1700_v23 = vpack.c.bf16 %v319_v20, %v318_v18  ;;  %v321_v25 = vld [vmem:[#allocation8 + $0x38] sm:$0xff]  ;;  %v226_v27 = vld [vmem:[#allocation7 + $0x50] sm:$0xff] }
  0xe1   :  { %1695 = vmatpush3.bf16.msra.mxu1 %v1692_v14  ;;  %v1676_v26 = vpack.c.bf16 %v225_v22, %v224_v21  ;;  %v227_v28 = vld [vmem:[#allocation7 + $0x58] sm:$0xff]  ;;  %v1704_v29 = vpack.c.bf16 %v321_v25, %v320_v24  ;;  %v322_v30 = vld [vmem:[#allocation8 + $0x40] sm:$0xff]  ;;  %v323_v31 = vld [vmem:[#allocation8 + $0x48] sm:$0xff] }
  0xe2   :  { %1667 = vmatpush3.bf16.msra.mxu0 %v1664_v5  ;;  %1697 = vmatprep.subr.bf16.mxu1 %v1696_v17  ;;  %v1680_v32 = vpack.c.bf16 %v227_v28, %v226_v27  ;;  %v228_v33 = vld [vmem:[#allocation7 + $0x60] sm:$0xff]  ;;  %v229_v34 = vld [vmem:[#allocation7 + $0x68] sm:$0xff]  ;;  %v1708_v35 = vpack.c.bf16 %v323_v31, %v322_v30  ;;  %v324_v36 = vld [vmem:[#allocation8 + $0x50] sm:$0xff] }
  0xe3   :  { %1669 = vmatprep.subr.bf16.mxu0 %v1668_v8  ;;  %v325_v37 = vld [vmem:[#allocation8 + $0x58] sm:$0xff]  ;;  %v1684_v38 = vpack.c.bf16 %v229_v34, %v228_v33  ;;  %v230_v39 = vld [vmem:[#allocation7 + $0x70] sm:$0xff]  ;;  %v326_v42 = vld [vmem:[#allocation8 + $0x60] sm:$0xff] }
  0xe4   :  { %v231_v40 = vld [vmem:[#allocation7 + $0x78] sm:$0xff]  ;;  %v1712_v41 = vpack.c.bf16 %v325_v37, %v324_v36  ;;  %v327_v43 = vld [vmem:[#allocation8 + $0x68] sm:$0xff]  ;;  %v424_v45 = vld [vmem:[#allocation10] sm:$0xff] }
  0xe5   :  { %1699 = vmatpush3.bf16.msra.mxu1 %v1696_v17  ;;  %v1688_v44 = vpack.c.bf16 %v231_v40, %v230_v39  ;;  %v425_v46 = vld [vmem:[#allocation10 + $0x8] sm:$0xff]  ;;  %v1716_v47 = vpack.c.bf16 %v327_v43, %v326_v42  ;;  %v426_v49 = vld [vmem:[#allocation10 + $0x10] sm:$0xff]  ;;  %v427_v50 = vld [vmem:[#allocation10 + $0x18] sm:$0xff] }
  0xe6   :  { %1671 = vmatpush3.bf16.msra.mxu0 %v1668_v8  ;;  %1701 = vmatprep.subr.bf16.mxu1 %v1700_v23  ;;  %v1724_v48 = vpack.c.bf16 %v425_v46, %v424_v45  ;;  %v2583_v51 = vld [vmem:[#allocation5 + $0x8] sm:$0xff]  ;;  %v1728_v52 = vpack.c.bf16 %v427_v50, %v426_v49  ;;  %v428_v53 = vld [vmem:[#allocation10 + $0x20] sm:$0xff]  ;;  %v429_v54 = vld [vmem:[#allocation10 + $0x28] sm:$0xff] }
  0xe7   :  { %1673 = vmatprep.subr.bf16.mxu0 %v1672_v19  ;;  %v1732_v55 = vpack.c.bf16 %v429_v54, %v428_v53  ;;  %v430_v56 = vld [vmem:[#allocation10 + $0x30] sm:$0xff]  ;;  %v431_v57 = vld [vmem:[#allocation10 + $0x38] sm:$0xff]  ;;  %v432_v59 = vld [vmem:[#allocation10 + $0x40] sm:$0xff] }
  0xe8   :  { %v1736_v58 = vpack.c.bf16 %v431_v57, %v430_v56  ;;  %v433_v60 = vld [vmem:[#allocation10 + $0x48] sm:$0xff]  ;;  %v434_v62 = vld [vmem:[#allocation10 + $0x50] sm:$0xff]  ;;  %v435_v63 = vld [vmem:[#allocation10 + $0x58] sm:$0xff] }
  0xe9   :  { %1703 = vmatpush3.bf16.msra.mxu1 %v1700_v23  ;;  %v1740_v61 = vpack.c.bf16 %v433_v60, %v432_v59  ;;  %v1744_v0 = vpack.c.bf16 %v435_v63, %v434_v62  ;;  %v436_v1 = vld [vmem:[#allocation10 + $0x60] sm:$0xff]  ;;  %v437_v2 = vld [vmem:[#allocation10 + $0x68] sm:$0xff]  ;;  %v328_v4 = vld [vmem:[#allocation8 + $0x70] sm:$0xff] }
  0xea   :  { %1675 = vmatpush3.bf16.msra.mxu0 %v1672_v19  ;;  %1705 = vmatprep.subr.bf16.mxu1 %v1704_v29  ;;  %v1748_v3 = vpack.c.bf16 %v437_v2, %v436_v1  ;;  %v329_v5 = vld [vmem:[#allocation8 + $0x78] sm:$0xff]  ;;  %v438_v7 = vld [vmem:[#allocation10 + $0x70] sm:$0xff]  ;;  %v526_v11 = vld [vmem:[#allocation11] sm:$0xff] }
  0xeb   :  { %1677 = vmatprep.subr.bf16.mxu0 %v1676_v26  ;;  %v1720_v6 = vpack.c.bf16 %v329_v5, %v328_v4  ;;  %v439_v8 = vld [vmem:[#allocation10 + $0x78] sm:$0xff]  ;;  %v527_v12 = vld [vmem:[#allocation11 + $0x8] sm:$0xff]  ;;  %v1169_v14 = vld [vmem:[%s2679_s8] ss:$0 sm:$0xff] }
  0xec   :  { %v1752_v9 = vpack.c.bf16 %v439_v8, %v438_v7  ;;  %v1756_v13 = vpack.c.bf16 %v527_v12, %v526_v11  ;;  %v528_v16 = vld [vmem:[#allocation11 + $0x10] sm:$0xff]  ;;  %v529_v17 = vld [vmem:[#allocation11 + $0x18] sm:$0xff]  ;;  %v2589_v22 = vld [vmem:[#allocation2] sm:$0xff] }
  0xed   :  { %1707 = vmatpush3.bf16.msra.mxu1 %v1704_v29  ;;  %v1760_v21 = vpack.c.bf16 %v529_v17, %v528_v16  ;;  %v530_v23 = vld [vmem:[#allocation11 + $0x20] sm:$0xff]  ;;  %v531_v24 = vld [vmem:[#allocation11 + $0x28] sm:$0xff]  ;;  %v533_v27 = vld [vmem:[#allocation11 + $0x38] sm:$0xff] }
  0xee   :  { %1679 = vmatpush3.bf16.msra.mxu0 %v1676_v26  ;;  %1709 = vmatprep.subr.bf16.mxu1 %v1708_v35  ;;  %v1764_v25 = vpack.c.bf16 %v531_v24, %v530_v23  ;;  %v532_v26 = vld [vmem:[#allocation11 + $0x30] sm:$0xff]  ;;  %v534_v29 = vld [vmem:[#allocation11 + $0x40] sm:$0xff]  ;;  %v535_v30 = vld [vmem:[#allocation11 + $0x48] sm:$0xff] }
  0xef   :  { %1681 = vmatprep.subr.bf16.mxu0 %v1680_v32  ;;  %v1768_v28 = vpack.c.bf16 %v533_v27, %v532_v26  ;;  %v1772_v31 = vpack.c.bf16 %v535_v30, %v534_v29  ;;  %v537_v33 = vld [vmem:[#allocation11 + $0x58] sm:$0xff]  ;;  %v539_v36 = vld [vmem:[#allocation11 + $0x68] sm:$0xff]  ;;  %v624_v42 = vld [vmem:[#allocation13] sm:$0xff] }
  0xf0   :  { %v541_v39 = vld [vmem:[#allocation11 + $0x78] sm:$0xff]  ;;  %v625_v43 = vld [vmem:[#allocation13 + $0x8] sm:$0xff]  ;;  %v736_v50 = vld [vmem:[#allocation14 + $0x10] sm:$0xff] }
  0xf1   :  { %1711 = vmatpush3.bf16.msra.mxu1 %v1708_v35  ;;  %v538_v35 = vld [vmem:[#allocation11 + $0x60] sm:$0xff]  ;;  %v1788_v45 = vpack.c.bf16 %v625_v43, %v624_v42  ;;  %v735_v46 = vld [vmem:[#allocation14 + $0x8] sm:$0xff]  ;;  %v627_v49 = vld [vmem:[#allocation13 + $0x18] sm:$0xff] }
  0xf2   :  { %1683 = vmatpush3.bf16.msra.mxu0 %v1680_v32  ;;  %1713 = vmatprep.subr.bf16.mxu1 %v1712_v41  ;;  %v536_v32 = vld [vmem:[#allocation11 + $0x50] sm:$0xff]  ;;  %v1780_v37 = vpack.c.bf16 %v539_v36, %v538_v35  ;;  %v737_v53 = vld [vmem:[#allocation14 + $0x18] sm:$0xff]  ;;  %v629_v56 = vld [vmem:[#allocation13 + $0x28] sm:$0xff] }
  0xf3   :  { %1685 = vmatprep.subr.bf16.mxu0 %v1684_v38  ;;  %v1776_v34 = vpack.c.bf16 %v537_v33, %v536_v32  ;;  %v1824_v54 = vpack.c.bf16 %v737_v53, %v736_v50  ;;  %v738_v57 = vld [vmem:[#allocation14 + $0x20] sm:$0xff]  ;;  %v739_v59 = vld [vmem:[#allocation14 + $0x28] sm:$0xff]  ;;  %v631_v62 = vld [vmem:[#allocation13 + $0x38] sm:$0xff] }
  0xf4   :  { %v1828_v60 = vpack.c.bf16 %v739_v59, %v738_v57  ;;  %v740_v63 = vld [vmem:[#allocation14 + $0x30] sm:$0xff]  ;;  %v741_v1 = vld [vmem:[#allocation14 + $0x38] sm:$0xff]  ;;  %v633_v4 = vld [vmem:[#allocation13 + $0x48] sm:$0xff] }
  0xf5   :  { %1715 = vmatpush3.bf16.msra.mxu1 %v1712_v41  ;;  %v2592_v41 = vld [vmem:[#allocation2 + $0x8] sm:$0xff]  ;;  %v1832_v2 = vpack.c.bf16 %v741_v1, %v740_v63  ;;  %v742_v5 = vld [vmem:[#allocation14 + $0x40] sm:$0xff]  ;;  %v635_v11 = vld [vmem:[#allocation13 + $0x58] sm:$0xff] }
  0xf6   :  { %1687 = vmatpush3.bf16.msra.mxu0 %v1684_v38  ;;  %1717 = vmatprep.subr.bf16.mxu1 %v1716_v47  ;;  %v540_v38 = vld [vmem:[#allocation11 + $0x70] sm:$0xff]  ;;  %v743_v7 = vld [vmem:[#allocation14 + $0x48] sm:$0xff]  ;;  %v636_v16 = vld [vmem:[#allocation13 + $0x60] sm:$0xff] }
  0xf7   :  { %1689 = vmatprep.subr.bf16.mxu0 %v1688_v44  ;;  %v1784_v40 = vpack.c.bf16 %v541_v39, %v540_v38  ;;  %v1836_v8 = vpack.c.bf16 %v743_v7, %v742_v5  ;;  %v744_v12 = vld [vmem:[#allocation14 + $0x50] sm:$0xff]  ;;  %v637_v17 = vld [vmem:[#allocation13 + $0x68] sm:$0xff]  ;;  %v639_v24 = vld [vmem:[#allocation13 + $0x78] sm:$0xff] }
  0xf8   :  { %v638_v23 = vld [vmem:[#allocation13 + $0x70] sm:$0xff]  ;;  %v749_v27 = vld [vmem:[#allocation14 + $0x78] sm:$0xff]  ;;  %v1170_v29 = vld [vmem:[%s2652_s5] ss:$0 sm:$0xff] }
  0xf9   :  { %1719 = vmatpush3.bf16.msra.mxu1 %v1716_v47  ;;  %v1816_v26 = vpack.c.bf16 %v639_v24, %v638_v23  ;;  %v1173_v43 = vld [vmem:[%s2654_s7] ss:$0 sm:$0xff]  ;;  %v841_v63 = vld [vmem:[#allocation16 + $0x28] sm:$0xff]  ;;  %v842_v1 = vld [vmem:[#allocation16 + $0x30] sm:$0xff] }
  0xfa   :  { %1691 = vmatpush3.bf16.msra.mxu0 %v1688_v44  ;;  %1721 = vmatprep.subr.bf16.mxu1 %v1720_v6  ;;  %v734_v44 = vld [vmem:[#allocation14] sm:$0xff]  ;;  %v845_v5 = vld [vmem:[#allocation16 + $0x48] sm:$0xff]  ;;  %v846_v7 = vld [vmem:[#allocation16 + $0x50] sm:$0xff] }
  0xfb   :  { %1725 = vmatprep.subr.bf16.mxu0 %v1724_v48  ;;  %v1820_v47 = vpack.c.bf16 %v735_v46, %v734_v44  ;;  %v954_v24 = vld [vmem:[#allocation19 + $0x20] sm:$0xff] }
  0xfd   :  { %1378 = vmatmul.mubr.f32.vlgmr.msra.gmra.mrb[0].mxu0 %v2583_v51  ;;  %1723 = vmatpush3.bf16.msra.mxu1 %v1720_v6 }
  0xfe   :  { %1727 = vmatpush3.bf16.msra.mxu0 %v1724_v48  ;;  %1757 = vmatprep.subr.bf16.mxu1 %v1756_v13  ;;  %v626_v48 = vld [vmem:[#allocation13 + $0x10] sm:$0xff] }
  0xff   :  { %1729 = vmatprep.subr.bf16.mxu0 %v1728_v52 }
 0x102   :  { %1731 = vmatpush3.bf16.msra.mxu0 %v1728_v52  ;;  %v1792_v52 = vpack.c.bf16 %v627_v49, %v626_v48 }
 0x103   :  { %1733 = vmatprep.subr.bf16.mxu0 %v1732_v55 }
 0x106   :  { %1735 = vmatpush3.bf16.msra.mxu0 %v1732_v55  ;;  %v628_v55 = vld [vmem:[#allocation13 + $0x20] sm:$0xff] }
 0x107   :  { %1737 = vmatprep.subr.bf16.mxu0 %v1736_v58 }
 0x10a   :  { %1739 = vmatpush3.bf16.msra.mxu0 %v1736_v58  ;;  %v1796_v58 = vpack.c.bf16 %v629_v56, %v628_v55 }
 0x10b   :  { %1741 = vmatprep.subr.bf16.mxu0 %v1740_v61 }
 0x10e   :  { %1743 = vmatpush3.bf16.msra.mxu0 %v1740_v61  ;;  %v630_v61 = vld [vmem:[#allocation13 + $0x30] sm:$0xff] }
 0x10f   :  { %1745 = vmatprep.subr.bf16.mxu0 %v1744_v0 }
 0x112   :  { %1747 = vmatpush3.bf16.msra.mxu0 %v1744_v0  ;;  %v1800_v0 = vpack.c.bf16 %v631_v62, %v630_v61  ;;  %v840_v62 = vld [vmem:[#allocation16 + $0x20] sm:$0xff] }
 0x113   :  { %1749 = vmatprep.subr.bf16.mxu0 %v1748_v3 }
 0x116   :  { %1751 = vmatpush3.bf16.msra.mxu0 %v1748_v3  ;;  %v632_v3 = vld [vmem:[#allocation13 + $0x40] sm:$0xff] }
 0x117   :  { %1753 = vmatprep.subr.bf16.mxu0 %v1752_v9  ;;  %v1804_v6 = vpack.c.bf16 %v633_v4, %v632_v3  ;;  %v844_v4 = vld [vmem:[#allocation16 + $0x40] sm:$0xff] }
 0x11a   :  { %1755 = vmatpush3.bf16.msra.mxu0 %v1752_v9  ;;  %v634_v9 = vld [vmem:[#allocation13 + $0x50] sm:$0xff] }
 0x11b   :  { %1789 = vmatprep.subr.bf16.mxu0 %v1788_v45 }
 0x1d0   :  { %v1379_v15 = vpop.f32.mrb[0].mxu0 }
 0x1d1   :  { %v305_v18 = vpop.f32.mrb[1].mxu0  ;;  %v311_v20 = vadd.f32 %v1379_v15, %v1169_v14 }
 0x1d2   :  { %v306_v19 = vadd.f32 %v1169_v14, %v305_v18  ;;  %v745_v14 = vld [vmem:[#allocation14 + $0x58] sm:$0xff]  ;;  %v746_v18 = vld [vmem:[#allocation14 + $0x60] sm:$0xff] }
 0x1d3   :  { %v1840_v15 = vpack.c.bf16 %v745_v14, %v744_v12  ;;  %v849_v12 = vld [vmem:[#allocation16 + $0x68] sm:$0xff]  ;;  %v850_v14 = vld [vmem:[#allocation16 + $0x70] sm:$0xff] }
 0x1d4   :  { %1412 = vmatprep.mubr.f32.mxu1 %v306_v19  ;;  %1447 = vmatprep.mubr.f32.mxu0 %v306_v19  ;;  %v1812_v19 = vpack.c.bf16 %v637_v17, %v636_v16  ;;  %v950_v17 = vld [vmem:[#allocation19] sm:$0xff] }
 0x1d5   :  { %1413 = vmatmul.mubr.f32.vlgmr.msra.gmra.mrb[0].mxu1 %v311_v20  ;;  %1448 = vmatmul.mubr.f32.vlgmr.msra.gmra.mrb[2].mxu0 %v311_v20  ;;  %v747_v20 = vld [vmem:[#allocation14 + $0x68] sm:$0xff] }
 0x1d6   :  { %1759 = vmatpush3.bf16.msra.mxu1 %v1756_v13  ;;  %1482 = vmatprep.mubr.f32.mxu1 %v2589_v22  ;;  %v1808_v13 = vpack.c.bf16 %v635_v11, %v634_v9  ;;  %v848_v11 = vld [vmem:[#allocation16 + $0x60] sm:$0xff] }
 0x1d7   :  { %1761 = vmatprep.subr.bf16.mxu1 %v1760_v21  ;;  %1791 = vmatpush3.bf16.msra.mxu0 %v1788_v45 }
 0x1d8   :  { %1793 = vmatprep.subr.bf16.mxu0 %v1792_v52 }
 0x1da   :  { %1763 = vmatpush3.bf16.msra.mxu1 %v1760_v21  ;;  %v1844_v21 = vpack.c.bf16 %v747_v20, %v746_v18  ;;  %v951_v18 = vld [vmem:[#allocation19 + $0x8] sm:$0xff] }
 0x1db   :  { %1765 = vmatprep.subr.bf16.mxu1 %v1764_v25  ;;  %1795 = vmatpush3.bf16.msra.mxu0 %v1792_v52  ;;  %v1174_v52 = vld [vmem:[%s2656_s9] ss:$0 sm:$0xff]  ;;  %v1884_v20 = vpack.c.bf16 %v951_v18, %v950_v17 }
 0x1dc   :  { %1797 = vmatprep.subr.bf16.mxu0 %v1796_v58  ;;  %v942_v18 = vld [vmem:[#allocation17 + $0x40] sm:$0xff] }
 0x1de   :  { %1767 = vmatpush3.bf16.msra.mxu1 %v1764_v25  ;;  %v748_v25 = vld [vmem:[#allocation14 + $0x70] sm:$0xff] }
 0x1df   :  { %1769 = vmatprep.subr.bf16.mxu1 %v1768_v28  ;;  %1799 = vmatpush3.bf16.msra.mxu0 %v1796_v58  ;;  %v837_v58 = vld [vmem:[#allocation16 + $0x8] sm:$0xff] }
 0x1e0   :  { %1801 = vmatprep.subr.bf16.mxu0 %v1800_v0 }
 0x1e2   :  { %1771 = vmatpush3.bf16.msra.mxu1 %v1768_v28  ;;  %v1848_v28 = vpack.c.bf16 %v749_v27, %v748_v25  ;;  %v955_v25 = vld [vmem:[#allocation19 + $0x28] sm:$0xff]  ;;  %v956_v27 = vld [vmem:[#allocation19 + $0x30] sm:$0xff] }
 0x1e3   :  { %1773 = vmatprep.subr.bf16.mxu1 %v1772_v31  ;;  %1803 = vmatpush3.bf16.msra.mxu0 %v1800_v0  ;;  %v1860_v0 = vpack.c.bf16 %v841_v63, %v840_v62  ;;  %v964_v63 = vld [vmem:[#allocation19 + $0x70] sm:$0xff] }
 0x1e4   :  { %1805 = vmatprep.subr.bf16.mxu0 %v1804_v6 }
 0x1e6   :  { %1775 = vmatpush3.bf16.msra.mxu1 %v1772_v31 }
 0x1e7   :  { %1777 = vmatprep.subr.bf16.mxu1 %v1776_v34  ;;  %1807 = vmatpush3.bf16.msra.mxu0 %v1804_v6  ;;  %v1868_v6 = vpack.c.bf16 %v845_v5, %v844_v4 }
 0x1e8   :  { %1809 = vmatprep.subr.bf16.mxu0 %v1808_v13 }
 0x1ea   :  { %1779 = vmatpush3.bf16.msra.mxu1 %v1776_v34 }
 0x1eb   :  { %1781 = vmatprep.subr.bf16.mxu1 %v1780_v37  ;;  %1811 = vmatpush3.bf16.msra.mxu0 %v1808_v13  ;;  %v1876_v13 = vpack.c.bf16 %v849_v12, %v848_v11  ;;  %v938_v12 = vld [vmem:[#allocation17 + $0x20] sm:$0xff] }
 0x1ec   :  { %1813 = vmatprep.subr.bf16.mxu0 %v1812_v19 }
 0x1ee   :  { %1783 = vmatpush3.bf16.msra.mxu1 %v1780_v37 }
 0x1ef   :  { %1785 = vmatprep.subr.bf16.mxu1 %v1784_v40  ;;  %1815 = vmatpush3.bf16.msra.mxu0 %v1812_v19  ;;  %v952_v19 = vld [vmem:[#allocation19 + $0x10] sm:$0xff] }
 0x1f0   :  { %1817 = vmatprep.subr.bf16.mxu0 %v1816_v26 }
 0x1f2   :  { %1787 = vmatpush3.bf16.msra.mxu1 %v1784_v40 }
 0x1f3   :  { %1821 = vmatprep.subr.bf16.mxu1 %v1820_v47  ;;  %1819 = vmatpush3.bf16.msra.mxu0 %v1816_v26  ;;  %v1892_v26 = vpack.c.bf16 %v955_v25, %v954_v24  ;;  %v946_v25 = vld [vmem:[#allocation17 + $0x60] sm:$0xff] }
 0x1f5   :  { %1483 = vmatmul.mubr.f32.vlgmr.msra.gmra.mrb[2].mxu1 %v2592_v41 }
 0x1f6   :  { %1823 = vmatpush3.bf16.msra.mxu1 %v1820_v47 }
 0x1f7   :  { %1825 = vmatprep.subr.bf16.mxu1 %v1824_v54 }
 0x1fa   :  { %1827 = vmatpush3.bf16.msra.mxu1 %v1824_v54 }
 0x1fb   :  { %1829 = vmatprep.subr.bf16.mxu1 %v1828_v60 }
 0x1fe   :  { %1831 = vmatpush3.bf16.msra.mxu1 %v1828_v60  ;;  %v839_v60 = vld [vmem:[#allocation16 + $0x18] sm:$0xff] }
 0x1ff   :  { %1833 = vmatprep.subr.bf16.mxu1 %v1832_v2 }
 0x202   :  { %1835 = vmatpush3.bf16.msra.mxu1 %v1832_v2  ;;  %v843_v2 = vld [vmem:[#allocation16 + $0x38] sm:$0xff] }
 0x203   :  { %1837 = vmatprep.subr.bf16.mxu1 %v1836_v8  ;;  %v1864_v3 = vpack.c.bf16 %v843_v2, %v842_v1  ;;  %v934_v2 = vld [vmem:[#allocation17] sm:$0xff] }
 0x206   :  { %1839 = vmatpush3.bf16.msra.mxu1 %v1836_v8  ;;  %v847_v8 = vld [vmem:[#allocation16 + $0x58] sm:$0xff] }
 0x207   :  { %1841 = vmatprep.subr.bf16.mxu1 %v1840_v15  ;;  %v1872_v9 = vpack.c.bf16 %v847_v8, %v846_v7 }
 0x20a   :  { %1843 = vmatpush3.bf16.msra.mxu1 %v1840_v15  ;;  %v851_v15 = vld [vmem:[#allocation16 + $0x78] sm:$0xff] }
 0x20b   :  { %1845 = vmatprep.subr.bf16.mxu1 %v1844_v21  ;;  %v1880_v16 = vpack.c.bf16 %v851_v15, %v850_v14  ;;  %v940_v15 = vld [vmem:[#allocation17 + $0x30] sm:$0xff] }
 0x20e   :  { %1847 = vmatpush3.bf16.msra.mxu1 %v1844_v21  ;;  %v953_v21 = vld [vmem:[#allocation19 + $0x18] sm:$0xff] }
 0x20f   :  { %1849 = vmatprep.subr.bf16.mxu1 %v1848_v28  ;;  %v1888_v23 = vpack.c.bf16 %v953_v21, %v952_v19  ;;  %v943_v19 = vld [vmem:[#allocation17 + $0x48] sm:$0xff]  ;;  %v944_v21 = vld [vmem:[#allocation17 + $0x50] sm:$0xff] }
 0x212   :  { %1851 = vmatpush3.bf16.msra.mxu1 %v1848_v28  ;;  %v957_v28 = vld [vmem:[#allocation19 + $0x38] sm:$0xff] }
 0x213   :  { %1885 = vmatprep.subr.bf16.mxu1 %v1884_v20 }
 0x2a8   :  { %v1414_v30 = vpop.f32.mrb[0].mxu1  ;;  %v1449_v31 = vpop.f32.mrb[2].mxu0 }
 0x2a9   :  { %v409_v32 = vadd.f32 %v1414_v30, %v1170_v29  ;;  %v403_v33 = vpop.f32.mrb[1].mxu1  ;;  %v513_v34 = vpop.f32.mrb[3].mxu0  ;;  %v519_v46 = vadd.f32 %v1449_v31, %v1173_v43  ;;  %v958_v30 = vld [vmem:[#allocation19 + $0x40] sm:$0xff]  ;;  %v959_v31 = vld [vmem:[#allocation19 + $0x48] sm:$0xff] }
 0x2aa   :  { %v404_v35 = vadd.f32 %v1170_v29, %v403_v33  ;;  %v514_v48 = vadd.f32 %v1173_v43, %v513_v34  ;;  %v1896_v29 = vpack.c.bf16 %v957_v28, %v956_v27  ;;  %v960_v33 = vld [vmem:[#allocation19 + $0x50] sm:$0xff]  ;;  %v961_v34 = vld [vmem:[#allocation19 + $0x58] sm:$0xff] }
 0x2ab   :  { %v1172_v36 = vmul.f32 -1.442695, %v409_v32  ;;  %v1900_v32 = vpack.c.bf16 %v959_v31, %v958_v30  ;;  %v948_v28 = vld [vmem:[#allocation17 + $0x70] sm:$0xff]  ;;  %v1180_v31 = vld [vmem:[%s2665_s18] ss:$0 sm:$0xff]  ;;  %s2279_s18 = smov [#allocation20]  }
 0x2ac   :  { %v1171_v37 = vmul.f32 -1.442695, %v404_v35  ;;  %v1904_v35 = vpack.c.bf16 %v961_v34, %v960_v33  ;;  %s1152_s0 = sshll.u32 %s2279_s18, 4  ;;  %s1153_s0 = int_to_ptr.vmem [resolvable:$true] %s1152_s0 }
 0x2ad   :  { %1964 = vpow2.f32 %v1172_v36  ;;  %v962_v36 = vld [vmem:[#allocation19 + $0x60] sm:$0xff]  ;;  %s2230_s19 = scalar_lea.vmem %s1153_s0, 256  ;;  %p2235_p5 = scmp.lt.s32.totalorder %s1153_s0, %s1153_s0 }
 0x2ae   :  { %1966 = vpow2.f32 %v1171_v37  ;;  %v963_v37 = vld [vmem:[#allocation19 + $0x68] sm:$0xff]  ;;  %p2231_p4 = scmp.ne.s32.totalorder %s1153_s0, %s2230_s19  ;;  %p2236_p6 = scmp.lt.s32.totalorder %s2230_s19, %s2230_s19 }
 0x2b0   :  { %p2237_p7 = por %p2236_p6, %p2235_p5 }
 0x2b2   :  { %p2238_p8 = pnand %p2237_p7, %p2231_p4 }
 0x2b7   :  { %v1965_v38 = vpop.eup %1964 }
 0x2b8   :  { %v1967_v39 = vpop.eup %1966  ;;  %v419_v40 = vadd.f32 1.0, %v1965_v38  ;;  %v1908_v38 = vpack.c.bf16 %v963_v37, %v962_v36 }
 0x2b9   :  { %v418_v42 = vadd.f32 1.0, %v1967_v39  ;;  %v1175_v39 = vld [vmem:[%s2658_s11] ss:$0 sm:$0xff] }
 0x2ba   :  { %1968 = vrcp.f32 %v419_v40 }
 0x2bb   :  { %1970 = vrcp.f32 %v418_v42 }
 0x2c4   :  { %v1969_v44 = vpop.eup %1968 }
 0x2c5   :  { %v1971_v45 = vpop.eup %1970  ;;  %v523_v47 = vmul.f32 %v1969_v44, %v2592_v41  ;;  %v836_v41 = vld [vmem:[#allocation16] sm:$0xff] }
 0x2c6   :  { %v522_v49 = vmul.f32 %v1971_v45, %v2589_v22  ;;  %v1852_v59 = vpack.c.bf16 %v837_v58, %v836_v41  ;;  %v838_v22 = vld [vmem:[#allocation16 + $0x10] sm:$0xff] }
 0x2c7   :  { %v2603_v50 = vadd.f32 %v523_v47, %v519_v46  ;;  %v1856_v61 = vpack.c.bf16 %v839_v60, %v838_v22 }
 0x2c8   :  { %v2608_v53 = vadd.f32 %v522_v49, %v514_v48  ;;  %v1484_v54 = vpop.f32.mrb[2].mxu1  ;;  %1853 = vmatprep.subr.bf16.mxu0 %v1852_v59 }
 0x2c9   :  { %v615_v55 = vpop.f32.mrb[3].mxu1  ;;  %v621_v57 = vadd.f32 %v1484_v54, %v1174_v52 }
 0x2ca   :  { %v616_v56 = vadd.f32 %v1174_v52, %v615_v55 }
 0x2cc   :  { %1517 = vmatprep.mubr.f32.mxu0 %v616_v56  ;;  %1552 = vmatprep.mubr.f32.mxu1 %v616_v56  ;;  %v1178_v56 = vld [vmem:[%s2660_s13] ss:$0 sm:$0xff] }
 0x2cd   :  { %1518 = vmatmul.mubr.f32.vlgmr.msra.gmra.mrb[4].mxu0 %v621_v57  ;;  %1553 = vmatmul.mubr.f32.vlgmr.msra.gmra.mrb[4].mxu1 %v621_v57 }
 0x2ce   :  { %1855 = vmatpush3.bf16.msra.mxu0 %v1852_v59  ;;  %1887 = vmatpush3.bf16.msra.mxu1 %v1884_v20  ;;  %v1932_v20 = vpack.c.bf16 %v943_v19, %v942_v18 }
 0x2cf   :  { %1857 = vmatprep.subr.bf16.mxu0 %v1856_v61  ;;  %1889 = vmatprep.subr.bf16.mxu1 %v1888_v23 }
 0x2d2   :  { %1859 = vmatpush3.bf16.msra.mxu0 %v1856_v61  ;;  %1891 = vmatpush3.bf16.msra.mxu1 %v1888_v23  ;;  %v945_v23 = vld [vmem:[#allocation17 + $0x58] sm:$0xff] }
 0x2d3   :  { %1861 = vmatprep.subr.bf16.mxu0 %v1860_v0  ;;  %1893 = vmatprep.subr.bf16.mxu1 %v1892_v26  ;;  %v1936_v24 = vpack.c.bf16 %v945_v23, %v944_v21 }
 0x2d6   :  { %1863 = vmatpush3.bf16.msra.mxu0 %v1860_v0  ;;  %1895 = vmatpush3.bf16.msra.mxu1 %v1892_v26  ;;  %v965_v0 = vld [vmem:[#allocation19 + $0x78] sm:$0xff]  ;;  %v947_v26 = vld [vmem:[#allocation17 + $0x68] sm:$0xff] }
 0x2d7   :  { %1865 = vmatprep.subr.bf16.mxu0 %v1864_v3  ;;  %1897 = vmatprep.subr.bf16.mxu1 %v1896_v29  ;;  %v1912_v1 = vpack.c.bf16 %v965_v0, %v964_v63  ;;  %v1940_v27 = vpack.c.bf16 %v947_v26, %v946_v25 }
 0x2da   :  { %1867 = vmatpush3.bf16.msra.mxu0 %v1864_v3  ;;  %1899 = vmatpush3.bf16.msra.mxu1 %v1896_v29  ;;  %v935_v3 = vld [vmem:[#allocation17 + $0x8] sm:$0xff]  ;;  %v949_v29 = vld [vmem:[#allocation17 + $0x78] sm:$0xff] }
 0x2db   :  { %1869 = vmatprep.subr.bf16.mxu0 %v1868_v6  ;;  %1901 = vmatprep.subr.bf16.mxu1 %v1900_v32  ;;  %v1916_v4 = vpack.c.bf16 %v935_v3, %v934_v2  ;;  %v1944_v30 = vpack.c.bf16 %v949_v29, %v948_v28 }
 0x2de   :  { %1871 = vmatpush3.bf16.msra.mxu0 %v1868_v6  ;;  %1903 = vmatpush3.bf16.msra.mxu1 %v1900_v32  ;;  %v936_v6 = vld [vmem:[#allocation17 + $0x10] sm:$0xff] }
 0x2df   :  { %1873 = vmatprep.subr.bf16.mxu0 %v1872_v9  ;;  %1905 = vmatprep.subr.bf16.mxu1 %v1904_v35 }
 0x2e2   :  { %1875 = vmatpush3.bf16.msra.mxu0 %v1872_v9  ;;  %1907 = vmatpush3.bf16.msra.mxu1 %v1904_v35 }
 0x2e3   :  { %1877 = vmatprep.subr.bf16.mxu0 %v1876_v13  ;;  %1909 = vmatprep.subr.bf16.mxu1 %v1908_v38 }
 0x2e6   :  { %1879 = vmatpush3.bf16.msra.mxu0 %v1876_v13  ;;  %1911 = vmatpush3.bf16.msra.mxu1 %v1908_v38  ;;  %v939_v13 = vld [vmem:[#allocation17 + $0x28] sm:$0xff] }
 0x2e7   :  { %1881 = vmatprep.subr.bf16.mxu0 %v1880_v16  ;;  %1913 = vmatprep.subr.bf16.mxu1 %v1912_v1  ;;  %v1924_v14 = vpack.c.bf16 %v939_v13, %v938_v12 }
 0x2ea   :  { %1883 = vmatpush3.bf16.msra.mxu0 %v1880_v16  ;;  %1915 = vmatpush3.bf16.msra.mxu1 %v1912_v1  ;;  %v941_v16 = vld [vmem:[#allocation17 + $0x38] sm:$0xff] }
 0x2eb   :  { %1917 = vmatprep.subr.bf16.mxu1 %v1916_v4  ;;  %v1928_v17 = vpack.c.bf16 %v941_v16, %v940_v15 }
 0x3a0   :  { %v1519_v40 = vpop.f32.mrb[4].mxu0  ;;  %v1554_v42 = vpop.f32.mrb[4].mxu1 }
 0x3a1   :  { %v719_v43 = vadd.f32 %v1519_v40, %v1175_v39  ;;  %v713_v44 = vpop.f32.mrb[5].mxu0  ;;  %v823_v45 = vpop.f32.mrb[5].mxu1  ;;  %v829_v58 = vadd.f32 %v1554_v42, %v1178_v56 }
 0x3a2   :  { %v714_v46 = vadd.f32 %v1175_v39, %v713_v44  ;;  %v824_v22 = vadd.f32 %v1178_v56, %v823_v45 }
 0x3a3   :  { %v1177_v47 = vmul.f32 -1.442695, %v719_v43 }
 0x3a4   :  { %v1176_v48 = vmul.f32 -1.442695, %v714_v46 }
 0x3a5   :  { %1972 = vpow2.f32 %v1177_v47 }
 0x3a6   :  { %1974 = vpow2.f32 %v1176_v48 }
 0x3af   :  { %v1973_v49 = vpop.eup %1972 }
 0x3b0   :  { %v1975_v52 = vpop.eup %1974  ;;  %v729_v54 = vadd.f32 1.0, %v1973_v49 }
 0x3b1   :  { %v728_v55 = vadd.f32 1.0, %v1975_v52 }
 0x3b2   :  { %1976 = vrcp.f32 %v729_v54 }
 0x3b3   :  { %1978 = vrcp.f32 %v728_v55 }
 0x3bc   :  { %v1977_v57 = vpop.eup %1976 }
 0x3bd   :  { %v1979_v41 = vpop.eup %1978  ;;  %v833_v59 = vmul.f32 %v1977_v57, %v2583_v51  ;;  %v1179_v51 = vld [vmem:[%s2662_s15] ss:$0 sm:$0xff] }
 0x3be   :  { %v832_v60 = vmul.f32 %v1979_v41, %v2580_v10  ;;  %v937_v10 = vld [vmem:[#allocation17 + $0x18] sm:$0xff] }
 0x3bf   :  { %v835_v61 = vadd.f32 %v833_v59, %v829_v58  ;;  %v1920_v11 = vpack.c.bf16 %v937_v10, %v936_v6 }
 0x3c0   :  { %v834_v62 = vadd.f32 %v832_v60, %v824_v22 }
 0x3c2   :  { %1587 = vmatprep.mubr.f32.mxu0 %v834_v62 }
 0x3c3   :  { %1588 = vmatmul.mubr.f32.vlgmr.msra.gmra.mrb[6].mxu0 %v835_v61 }
 0x496   :  { %v1589_v5 = vpop.f32.mrb[6].mxu0 }
 0x497   :  { %v925_v7 = vpop.f32.mrb[7].mxu0  ;;  %v931_v9 = vadd.f32 %v1589_v5, %v1179_v51 }
 0x498   :  { %v2621_v8 = vadd.f32 %v1179_v51, %v925_v7 }
 0x49a   :  { %1622 = vmatprep.mubr.f32.mxu1 %v2621_v8 }
 0x49b   :  { %1623 = vmatmul.mubr.f32.vlgmr.msra.gmra.mrb[6].mxu1 %v931_v9 }
 0x49c   :  { %1919 = vmatpush3.bf16.msra.mxu1 %v1916_v4  ;;  %1657 = vmatprep.mubr.f32.mxu1 %v2608_v53 }
 0x49d   :  { %1921 = vmatprep.subr.bf16.mxu1 %v1920_v11 }
 0x4a0   :  { %1923 = vmatpush3.bf16.msra.mxu1 %v1920_v11 }
 0x4a1   :  { %1925 = vmatprep.subr.bf16.mxu1 %v1924_v14 }
 0x4a4   :  { %1927 = vmatpush3.bf16.msra.mxu1 %v1924_v14 }
 0x4a5   :  { %1929 = vmatprep.subr.bf16.mxu1 %v1928_v17 }
 0x4a8   :  { %1931 = vmatpush3.bf16.msra.mxu1 %v1928_v17 }
 0x4a9   :  { %1933 = vmatprep.subr.bf16.mxu1 %v1932_v20 }
 0x4ac   :  { %1935 = vmatpush3.bf16.msra.mxu1 %v1932_v20 }
 0x4ad   :  { %1937 = vmatprep.subr.bf16.mxu1 %v1936_v24 }
 0x4b0   :  { %1939 = vmatpush3.bf16.msra.mxu1 %v1936_v24 }
 0x4b1   :  { %1941 = vmatprep.subr.bf16.mxu1 %v1940_v27 }
 0x4b4   :  { %1943 = vmatpush3.bf16.msra.mxu1 %v1940_v27 }
 0x4b5   :  { %1945 = vmatprep.subr.bf16.mxu1 %v1944_v30 }
 0x4b8   :  { %1947 = vmatpush3.bf16.msra.mxu1 %v1944_v30 }
 0x4bb   :  { %1658 = vmatmul.mubr.f32.vlgmr.msra.gmra.mrb[6].mxu1 %v2603_v50 }
 0x58e   :  { %v1659_v32 = vpop.f32.mrb[6].mxu1 }
 0x58f   :  { %v1124_v33 = vadd.f32 %v1659_v32, %v1180_v31  ;;  %v1107_v34 = vpop.f32.mrb[7].mxu1 }
 0x590   :  { %v1123_v35 = vadd.f32 %v1180_v31, %v1107_v34 }
 0x591   :  { %v1182_v36 = vmul.f32 -1.442695, %v1124_v33 }
 0x592   :  { %v1181_v37 = vmul.f32 -1.442695, %v1123_v35 }
 0x593   :  { %1980 = vpow2.f32 %v1182_v36 }
 0x594   :  { %1982 = vpow2.f32 %v1181_v37 }
 0x59d   :  { %v1981_v38 = vpop.eup %1980 }
 0x59e   :  { %v1983_v39 = vpop.eup %1982  ;;  %v1132_v40 = vadd.f32 1.0, %v1981_v38 }
 0x59f   :  { %v1131_v42 = vadd.f32 1.0, %v1983_v39 }
 0x5a0   :  { %1984 = vrcp.f32 %v1132_v40 }
 0x5a1   :  { %1986 = vrcp.f32 %v1131_v42 }
 0x5aa   :  { %v1985_v43 = vpop.eup %1984 }
 0x5ab   :  { %v1987_v44 = vpop.eup %1986  ;;  %v1140_v45 = vsub.f32 1.0, %v1985_v43  ;;  %v1138_v47 = vmul.f32 %v1985_v43, %v2603_v50 }
 0x5ac   :  { %v1139_v46 = vsub.f32 1.0, %v1987_v44  ;;  %v1137_v49 = vmul.f32 %v1987_v44, %v2608_v53 }
 0x5ad   :  { %v1142_v48 = vmul.f32 %v1140_v45, %v931_v9 }
 0x5ae   :  { %v1141_v52 = vmul.f32 %v1139_v46, %v2621_v8 }
 0x5af   :  { %v1144_v54 = vadd.f32 %v1142_v48, %v1138_v47 }
 0x5b0   :  { %v1143_v55 = vadd.f32 %v1141_v52, %v1137_v49 }
 0x5b1   :  { %1146 = vst [vmem:[#allocation20 + $0x8] sm:$0xff] %v1144_v54 }
 0x5b2   :  { %1145 = vst [vmem:[#allocation20] sm:$0xff] %v1143_v55 }
 0x5b3   :  { %2241 = shalt.err (!%p2238_p8)
}
 0x5b4   :  { %s2680_s1 = sld [smem:[#allocation32_spill]] }
 0x5ba   :  { %s2242_s6 = scalar_lea.hbm %s2680_s1, 256 }
 0x5bb   :  { %p2243_p9 = scmp.ne.s32.totalorder %s2680_s1, %s2242_s6  ;;  %p2246_p10 = scmp.lt.u32.totalorder %s2242_s6, %s2680_s1 }
 0x5bd   :  { %p2248_p11 = pnand %p2246_p10, %p2243_p9 }
 0x5bf   :  { %2251 = shalt.err (!%p2248_p11)
}
 0x5c0   :  { %1158 = dma.vmem_to_hbm [thread:$0]  %s1153_s0, 256, %s2680_s1, [#allocation4], %s2268_s28, %s2268_s28, %s2269_s29  }
 0x5c1   :  { %2264 = dma.done.wait [#allocation4], 256  }
 0x5c2   :  { %2265 = vsyncadd [#allocation4], 4294967040 }
 0x5c3   :  { %1162 = vsyncpa [#allocation3], 1 }
 0x5c4   :  { %1163 = vsyncpa [#allocation6], 1 }
 0x5c5   :  { %1164 = vsyncpa [#allocation9], 1 }
 0x5c6   :  { %1165 = vsyncpa [#allocation12], 1 }
 0x5c7   :  { %1166 = vsyncpa [#allocation15], 1 }
 0x5c8   :  { %1167 = vsyncpa [#allocation18], 1 }
 0x5c9   :  { %1168 = vsyncpa [#allocation4], 1 }

</bundles_post_ra>
